<compile_context>
chip_gen: v5e
topology: v5e:2x2
jax: 0.10.0
libtpu: 0.0.40
codegen_flags: <defaults>
</compile_context>

<pallas_src>
import functools

import jax
import jax.numpy as jnp
from jax.experimental import pallas as pl
from jax.experimental.pallas import tpu as pltpu


FOLD = 8  # rows folded per super-row; 8 * out_dim(16) = 128 lanes exactly.


def _round_up(a, b):
    return (a + b - 1) // b * b


def mlp_kernel(x_ref, w1_ref, b1_ref, w2_ref, b2_ref, w3_ref, b3_ref, o_ref,
               *, chunk, num_chunks):
    """One grid step: a block of folded rows, processed in vreg-sized sub-chunks.

    The sub-chunk loop is fully unrolled with static slice starts (equivalent to
    lax.fori_loop(..., unroll=True) at static trip count, but every pl.ds start
    is a compile-time constant, so no dynamic-index overhead).
    """
    for c in range(num_chunks):
        r0 = c * chunk
        xb = x_ref[pl.ds(r0, chunk), :]
        # Layer 1: MXU matmul with f32 accumulation; bias + ReLU in f32 on VPU.
        h = jnp.dot(xb, w1_ref[...], preferred_element_type=jnp.float32)
        h = jnp.maximum(h + b1_ref[...], 0.0)
        # Layer 2.
        h = jnp.dot(h.astype(w2_ref.dtype), w2_ref[...],
                    preferred_element_type=jnp.float32)
        h = jnp.maximum(h + b2_ref[...], 0.0)
        # Output layer (no activation). Folded output is lane-dense (chunk, 128)
        # -> full-width unmasked store.
        y = jnp.dot(h.astype(w3_ref.dtype), w3_ref[...],
                    preferred_element_type=jnp.float32)
        o_ref[pl.ds(r0, chunk), :] = (y + b3_ref[...]).astype(o_ref.dtype)


def _block_diag(w, fold):
    """(din, dout) -> block-diagonal (fold*din, fold*dout)."""
    return jnp.kron(jnp.eye(fold, dtype=w.dtype), w)


def mlp_pallas(x, params, *, compute_dtype=jnp.bfloat16, out_dtype=None,
               chunk_f=32, target_block_f=512):
    """x: (..., in_dim). params: dict of w1,b1,w2,b2,w3,b3 (weights (in,out))."""
    w1, b1 = params["w1"], params["b1"]
    w2, b2 = params["w2"], params["b2"]
    w3, b3 = params["w3"], params["b3"]
    in_dim, h1 = w1.shape
    h2 = w2.shape[1]
    out_dim = w3.shape[1]
    if out_dtype is None:
        out_dtype = x.dtype

    F = FOLD
    fin, fh1, fh2 = F * in_dim, F * h1, F * h2
    fout = F * out_dim
    fout_pad = _round_up(fout, 128)          # == 128 for out_dim = 16 (no pad)

    lead_shape = x.shape[:-1]
    xf = x.reshape(-1, in_dim)
    n = xf.shape[0]
    nf = pl.cdiv(max(n, 1), F)               # folded row count

    # Block-size selection: big DMA blocks (few ~600-cycle grid steps), but keep
    # >= 2 grid steps when there is enough work so both v7x TensorCores get a
    # share of the "parallel" axis.
    block_f = target_block_f
    if nf <= block_f:
        block_f = max(chunk_f, _round_up(pl.cdiv(nf, 2), chunk_f))
    block_f = _round_up(block_f, chunk_f)
    nf_pad = _round_up(nf, block_f)
    n_rows_pad = nf_pad * F

    if n_rows_pad != n:
        xf = jnp.pad(xf, ((0, n_rows_pad - n), (0, 0)))
    # Fold 8 rows into one lane-dense super-row (free contiguous reshape).
    x_fold = xf.reshape(nf_pad, fin).astype(compute_dtype)

    # Block-diagonal ("folded") weights: identical math (extra entries are exact
    # zeros), every operand/result a multiple of 128 lanes, and ~0.9 MB resident
    # bf16 weights total.
    w1_c = _block_diag(w1, F).astype(compute_dtype)
    w2_c = _block_diag(w2, F).astype(compute_dtype)
    w3_f = _block_diag(w3, F)
    b1_r = jnp.tile(b1, F).reshape(1, fh1).astype(jnp.float32)
    b2_r = jnp.tile(b2, F).reshape(1, fh2).astype(jnp.float32)
    b3_r = jnp.tile(b3, F).reshape(1, fout).astype(jnp.float32)
    if fout_pad != fout:                      # generality only; unused here
        w3_f = jnp.pad(w3_f, ((0, 0), (0, fout_pad - fout)))
        b3_r = jnp.pad(b3_r, ((0, 0), (0, fout_pad - fout)))
    w3_c = w3_f.astype(compute_dtype)

    grid = (nf_pad // block_f,)
    num_chunks = block_f // chunk_f

    itemsize = jnp.dtype(compute_dtype).itemsize
    flops = 2 * nf_pad * (fin * fh1 + fh1 * fh2 + fh2 * fout_pad)
    bytes_accessed = (
        nf_pad * fin * itemsize                                    # x stream in
        + (fin * fh1 + fh1 * fh2 + fh2 * fout_pad) * itemsize      # resident weights
        + (fh1 + fh2 + fout_pad) * 4                               # biases
        + nf_pad * fout_pad * jnp.dtype(out_dtype).itemsize)       # output stream

    kernel = functools.partial(mlp_kernel, chunk=chunk_f, num_chunks=num_chunks)

    out = pl.pallas_call(
        kernel,
        out_shape=jax.ShapeDtypeStruct((nf_pad, fout_pad), out_dtype),
        grid_spec=pltpu.PrefetchScalarGridSpec(
            num_scalar_prefetch=0,
            grid=grid,
            in_specs=[
                pl.BlockSpec((block_f, fin), lambda i: (i, 0)),    # x (streamed)
                pl.BlockSpec((fin, fh1), lambda i: (0, 0)),        # w1 (resident)
                pl.BlockSpec((1, fh1), lambda i: (0, 0)),          # b1
                pl.BlockSpec((fh1, fh2), lambda i: (0, 0)),        # w2
                pl.BlockSpec((1, fh2), lambda i: (0, 0)),          # b2
                pl.BlockSpec((fh2, fout_pad), lambda i: (0, 0)),   # w3
                pl.BlockSpec((1, fout_pad), lambda i: (0, 0)),     # b3
            ],
            out_specs=pl.BlockSpec((block_f, fout_pad), lambda i: (i, 0)),
        ),
        compiler_params=pltpu.CompilerParams(
            dimension_semantics=("parallel",),
        ),
        cost_estimate=pl.CostEstimate(
            flops=flops, transcendentals=0, bytes_accessed=bytes_accessed),
    )(x_fold, w1_c, b1_r, w2_c, b2_r, w3_c, b3_r)

    # Unfold: slice any generality padding, then a free contiguous reshape back
    # to (rows, out_dim) and drop padded rows.
    y = out[:, :fout].reshape(n_rows_pad, out_dim)[:n]
    return y.reshape(*lead_shape, out_dim)


def mlp_reference(x, params):
    """Pure-JAX reference mirroring the PyTorch Sequential (f32)."""
    h = jnp.maximum(x @ params["w1"] + params["b1"], 0.0)
    h = jnp.maximum(h @ params["w2"] + params["b2"], 0.0)
    return h @ params["w3"] + params["b3"]


def init_params(key, in_dim, hidden_list, out_dim):
    """Deterministic parameter init (weights stored as (in, out))."""
    params = {}
    dims = [in_dim] + list(hidden_list) + [out_dim]
    names = ["1", "2", "3"]
    for name, (din, dout) in zip(names, zip(dims[:-1], dims[1:])):
        key, kw, kb = jax.random.split(key, 3)
        bound = 1.0 / jnp.sqrt(din)
        params[f"w{name}"] = jax.random.uniform(
            kw, (din, dout), jnp.float32, -bound, bound)
        params[f"b{name}"] = jax.random.uniform(
            kb, (dout,), jnp.float32, -bound, bound)
    return params


if __name__ == "__main__":
    # LIIF MLP shapes: features last, in_dim=32, hidden_list=[64, 64], out_dim=16;
    # N = 2*16*16 = 512 rows -> 64 folded rows -> grid of 2 parallel steps.
    in_dim, hidden_list, out_dim = 32, [64, 64], 16

    key = jax.random.PRNGKey(0)
    kx, kp = jax.random.split(key)
    x = jax.random.normal(kx, (2, 16, 16, in_dim), dtype=jnp.float32)
    params = init_params(kp, in_dim, hidden_list, out_dim)

    y_ref = mlp_reference(x, params)

    # f32 compute path: numerically equivalent to the reference.
    y_f32 = jax.block_until_ready(
        mlp_pallas(x, params, compute_dtype=jnp.float32))
    assert y_f32.shape == (2, 16, 16, out_dim), y_f32.shape
    assert jnp.allclose(y_f32, y_ref, atol=1e-4, rtol=1e-4), float(
        jnp.max(jnp.abs(y_f32 - y_ref)))

    # bf16 operand + bf16 output path (fast, memory-lean): looser tolerance.
    y_bf16 = jax.block_until_ready(
        mlp_pallas(x, params, out_dtype=jnp.bfloat16))
    assert y_bf16.shape == (2, 16, 16, out_dim), y_bf16.shape
    assert jnp.allclose(y_bf16.astype(jnp.float32), y_ref,
                        atol=1e-1, rtol=1e-1), float(
        jnp.max(jnp.abs(y_bf16.astype(jnp.float32) - y_ref)))

    print("KERNEL_OK")
</pallas_src>

<mosaic_0001>
module attributes {stable_mosaic.version = 11 : i64} {
  func.func @mlp_kernel(%arg0: i32, %arg1: memref<32x256xf32, #tpu.memory_space<vmem>>, %arg2: memref<256x512xf32, #tpu.memory_space<vmem>>, %arg3: memref<1x512xf32, #tpu.memory_space<vmem>>, %arg4: memref<512x512xf32, #tpu.memory_space<vmem>>, %arg5: memref<1x512xf32, #tpu.memory_space<vmem>>, %arg6: memref<512x128xf32, #tpu.memory_space<vmem>>, %arg7: memref<1x128xf32, #tpu.memory_space<vmem>>, %arg8: memref<32x128xf32, #tpu.memory_space<vmem>>) attributes {dimension_semantics = [#tpu.dimension_semantics<parallel>], iteration_bounds = array<i64: 2>, scalar_prefetch = 0 : i64, scratch_operands = 0 : i64, tpu.core_type = #tpu.core_type<tc>, window_params = [{transform_indices = @transform_0, window_bounds = array<i64: 32, 256>}, {pipeline_mode = #tpu.pipeline_mode<synchronous>, transform_indices = @transform_1, window_bounds = array<i64: 256, 512>}, {pipeline_mode = #tpu.pipeline_mode<synchronous>, transform_indices = @transform_2, window_bounds = array<i64: 1, 512>}, {pipeline_mode = #tpu.pipeline_mode<synchronous>, transform_indices = @transform_3, window_bounds = array<i64: 512, 512>}, {pipeline_mode = #tpu.pipeline_mode<synchronous>, transform_indices = @transform_4, window_bounds = array<i64: 1, 512>}, {pipeline_mode = #tpu.pipeline_mode<synchronous>, transform_indices = @transform_5, window_bounds = array<i64: 512, 128>}, {pipeline_mode = #tpu.pipeline_mode<synchronous>, transform_indices = @transform_6, window_bounds = array<i64: 1, 128>}, {transform_indices = @transform_7, window_bounds = array<i64: 32, 128>}]} {
    %c0 = arith.constant 0 : index
    %c0_0 = arith.constant 0 : index
    %0 = vector.load %arg1[%c0, %c0_0] : memref<32x256xf32, #tpu.memory_space<vmem>>, vector<32x256xf32>
    %c0_1 = arith.constant 0 : index
    %c0_2 = arith.constant 0 : index
    %1 = vector.load %arg2[%c0_1, %c0_2] : memref<256x512xf32, #tpu.memory_space<vmem>>, vector<256x512xf32>
    %cst = arith.constant dense<0.000000e+00> : vector<32x512xf32>
    %2 = tpu.matmul %0, %1, %cst {dimension_numbers = #tpu.dot_dimension_numbers<[1], [0], [0], [1], [0, 0, 1, 1], [], []>} : vector<32x256xf32>, vector<256x512xf32>, vector<32x512xf32> -> vector<32x512xf32>
    %c0_3 = arith.constant 0 : index
    %c0_4 = arith.constant 0 : index
    %3 = vector.load %arg3[%c0_3, %c0_4] : memref<1x512xf32, #tpu.memory_space<vmem>>, vector<1x512xf32>
    %4 = vector.broadcast %3 : vector<1x512xf32> to vector<32x512xf32>
    %5 = arith.addf %2, %4 : vector<32x512xf32>
    %cst_5 = arith.constant 0.000000e+00 : f32
    %6 = vector.broadcast %cst_5 : f32 to vector<32x512xf32>
    %7 = arith.maximumf %5, %6 : vector<32x512xf32>
    %c0_6 = arith.constant 0 : index
    %c0_7 = arith.constant 0 : index
    %8 = vector.load %arg4[%c0_6, %c0_7] : memref<512x512xf32, #tpu.memory_space<vmem>>, vector<512x512xf32>
    %cst_8 = arith.constant dense<0.000000e+00> : vector<32x512xf32>
    %9 = tpu.matmul %7, %8, %cst_8 {dimension_numbers = #tpu.dot_dimension_numbers<[1], [0], [0], [1], [0, 0, 1, 1], [], []>} : vector<32x512xf32>, vector<512x512xf32>, vector<32x512xf32> -> vector<32x512xf32>
    %c0_9 = arith.constant 0 : index
    %c0_10 = arith.constant 0 : index
    %10 = vector.load %arg5[%c0_9, %c0_10] : memref<1x512xf32, #tpu.memory_space<vmem>>, vector<1x512xf32>
    %11 = vector.broadcast %10 : vector<1x512xf32> to vector<32x512xf32>
    %12 = arith.addf %9, %11 : vector<32x512xf32>
    %cst_11 = arith.constant 0.000000e+00 : f32
    %13 = vector.broadcast %cst_11 : f32 to vector<32x512xf32>
    %14 = arith.maximumf %12, %13 : vector<32x512xf32>
    %c0_12 = arith.constant 0 : index
    %c0_13 = arith.constant 0 : index
    %15 = vector.load %arg6[%c0_12, %c0_13] : memref<512x128xf32, #tpu.memory_space<vmem>>, vector<512x128xf32>
    %cst_14 = arith.constant dense<0.000000e+00> : vector<32x128xf32>
    %16 = tpu.matmul %14, %15, %cst_14 {dimension_numbers = #tpu.dot_dimension_numbers<[1], [0], [0], [1], [0, 0, 1, 1], [], []>} : vector<32x512xf32>, vector<512x128xf32>, vector<32x128xf32> -> vector<32x128xf32>
    %c0_15 = arith.constant 0 : index
    %c0_16 = arith.constant 0 : index
    %17 = vector.load %arg7[%c0_15, %c0_16] : memref<1x128xf32, #tpu.memory_space<vmem>>, vector<1x128xf32>
    %18 = vector.broadcast %17 : vector<1x128xf32> to vector<32x128xf32>
    %19 = arith.addf %16, %18 : vector<32x128xf32>
    %c0_17 = arith.constant 0 : index
    %c0_18 = arith.constant 0 : index
    %20 = vector.load %arg8[%c0_17, %c0_18] : memref<32x128xf32, #tpu.memory_space<vmem>>, vector<32x128xf32>
    tpu.vector_store %arg8[%c0_17, %c0_18], %19 {strides = array<i32>} : memref<32x128xf32, #tpu.memory_space<vmem>>, vector<32x128xf32>,
    return
  }
  func.func @transform_0(%arg0: i32) -> (i32, i32) {
    %c0_i32 = arith.constant 0 : i32
    %c0_i32_0 = arith.constant 0 : i32
    return %arg0, %c0_i32 : i32, i32
  }
  func.func @transform_1(%arg0: i32) -> (i32, i32) {
    %c0_i32 = arith.constant 0 : i32
    %c0_i32_0 = arith.constant 0 : i32
    %c0_i32_1 = arith.constant 0 : i32
    return %c0_i32, %c0_i32_0 : i32, i32
  }
  func.func @transform_2(%arg0: i32) -> (i32, i32) {
    %c0_i32 = arith.constant 0 : i32
    %c0_i32_0 = arith.constant 0 : i32
    %c0_i32_1 = arith.constant 0 : i32
    return %c0_i32, %c0_i32_0 : i32, i32
  }
  func.func @transform_3(%arg0: i32) -> (i32, i32) {
    %c0_i32 = arith.constant 0 : i32
    %c0_i32_0 = arith.constant 0 : i32
    %c0_i32_1 = arith.constant 0 : i32
    return %c0_i32, %c0_i32_0 : i32, i32
  }
  func.func @transform_4(%arg0: i32) -> (i32, i32) {
    %c0_i32 = arith.constant 0 : i32
    %c0_i32_0 = arith.constant 0 : i32
    %c0_i32_1 = arith.constant 0 : i32
    return %c0_i32, %c0_i32_0 : i32, i32
  }
  func.func @transform_5(%arg0: i32) -> (i32, i32) {
    %c0_i32 = arith.constant 0 : i32
    %c0_i32_0 = arith.constant 0 : i32
    %c0_i32_1 = arith.constant 0 : i32
    return %c0_i32, %c0_i32_0 : i32, i32
  }
  func.func @transform_6(%arg0: i32) -> (i32, i32) {
    %c0_i32 = arith.constant 0 : i32
    %c0_i32_0 = arith.constant 0 : i32
    %c0_i32_1 = arith.constant 0 : i32
    return %c0_i32, %c0_i32_0 : i32, i32
  }
  func.func @transform_7(%arg0: i32) -> (i32, i32) {
    %c0_i32 = arith.constant 0 : i32
    %c0_i32_0 = arith.constant 0 : i32
    return %arg0, %c0_i32 : i32, i32
  }
}

</mosaic_0001>

<bundles_post_ra>
// kernel: tpu_custom_call.1
= control target key start
LH: loop header
LB: loop body
LE: loop exit
PB: predicated region body
PF: predicated region fallthrough
CT: control target
= control target key end

     0   :  { %s2663_s0 = inlined_call_operand.hbm [shape: f32[64,256], index: 0, kind: input, shape index: {}]   ;;  %s2664_s1 = inlined_call_operand.hbm [shape: f32[256,512], index: 1, kind: input, shape index: {}]   ;;  %s2665_s2 = inlined_call_operand.hbm [shape: f32[1,512], index: 2, kind: input, shape index: {}]   ;;  %s2666_s3 = inlined_call_operand.hbm [shape: f32[512,512], index: 3, kind: input, shape index: {}]   ;;  %s2667_s4 = inlined_call_operand.hbm [shape: f32[1,512], index: 4, kind: input, shape index: {}]   ;;  %s2668_s5 = inlined_call_operand.hbm [shape: f32[512,128], index: 5, kind: input, shape index: {}]   ;;  %s2669_s6 = inlined_call_operand.vmem [shape: f32[1,128], index: 6, kind: input, shape index: {}]   ;;  %s2670_s7 = inlined_call_operand.hbm [shape: f32[64,128], index: 7, kind: output, shape index: {}]  }
   0x1   :  { %2671 = sst [smem:[#allocation19_spill]] %s2664_s1 }
   0x2   :  { %2672 = sst [smem:[#allocation20_spill]] %s2665_s2 }
   0x3   :  { %12 = vsyncpa [#allocation3], 0 }
   0x4   :  { %14 = vsyncpa [#allocation3 + $0x1], 0 }
   0x5   :  { %15 = vsyncpa [#allocation6], 0 }
   0x6   :  { %16 = vsyncpa [#allocation9], 0 }
   0x7   :  { %17 = vsyncpa [#allocation12], 0 }
   0x8   :  { %18 = vsyncpa [#allocation4], 0 }
   0x9   :  { %20 = vsyncpa [#allocation4 + $0x1], 0  ;;  %s2293_s24 = smov 0   ;;  %s2295_s25 = smov 0  }
   0xa   :  { %s2297_s26 = smov 0   ;;  %s2299_s27 = smov 0  }
   0xb LB: > { %s2673_s1 = sld [smem:[#allocation19_spill]]  ;;  %s2317_s8 = sadd.s32 4294967295, %s2238_s27   ;;  %s2238_s27 = sphi %s2299_s27, %s2686_s27   ;;  %s2234_s26 = sphi %s2297_s26, %s2685_s26   ;;  %s2230_s25 = sphi %s2295_s25, %s2684_s25   ;;  %s2226_s24 = sphi %s2293_s24, %s2683_s24  }
   0xc   : > { %p1847_p0 = scmp.ge.s32.totalorder %s2238_s27, 1  ;;  %p47_p1 = scmp.eq.s32.totalorder %s2317_s8, 0 }
   0xd   : > { %p209_p2 = scmp.lt.s32.totalorder %s2238_s27, 3  ;;  %s2240_s10 = smov [#allocation5]  }
   0xe   : > { %s222_s11 = sshll.u32 %s2240_s10, 4  ;;  %s246_s14 = sshll.u32 %s2666_s3, 4  ;;  %s223_s11 = int_to_ptr.vmem [resolvable:$true] %s222_s11  ;;  %s247_s14 = int_to_ptr.hbm [resolvable:$true] %s246_s14 }
   0xf   : > { %p2322_p3 = pnand %p1847_p0, %p209_p2  ;;  %s2676_s2 = sld [smem:[#allocation20_spill]] }
  0x10   : > { %s2241_s19 = smov [#allocation8]   ;;  %s2242_s21 = smov 512  }
  0x11   : > { %s220_s30 = sshll.u32 %s2673_s1, 4  ;;  %p1898_p4 = pneg %p2322_p3  ;;  %s221_s30 = int_to_ptr.hbm [resolvable:$true] %s220_s30 }
  0x12   : > { %s248_s20 = sshll.u32 %s2241_s19, 4  ;;  %s2243_s22 = smov 32   ;;  %s249_s20 = int_to_ptr.vmem [resolvable:$true] %s248_s20 }
  0x13   : > { %p2334_p6 = pnand %p1898_p4, %p47_p1  ;;  %s261_s29 = sshll.u32 %s2667_s4, 4  ;;  %s262_s29 = int_to_ptr.hbm [resolvable:$true] %s261_s29 }
  0x14   : > { %s2244_s10 = smov [#allocation7]   ;;  %s272_s16 = sshll.u32 %s2668_s5, 4  ;;  %s273_s16 = int_to_ptr.hbm [resolvable:$true] %s272_s16 }
  0x15   : > { %s235_s18 = sshll.u32 %s2676_s2, 4  ;;  %s237_s12 = sshll.u32 %s2244_s10, 4  ;;  %s236_s18 = int_to_ptr.hbm [resolvable:$true] %s235_s18  ;;  %s238_s12 = int_to_ptr.vmem [resolvable:$true] %s237_s12 }
  0x16   : > { %1901 = dma.hbm_to_vmem [thread:$0]  (!%p2334_p6), %s221_s30, 16384, %s223_s11, [#allocation6], %s2242_s21, %s2242_s21, %s2243_s22  }
  0x17   : > { %1907 = dma.hbm_to_vmem [thread:$0]  (!%p2334_p6), %s247_s14, 32768, %s249_s20, [#allocation9], %s2242_s21, %s2242_s21, %s2243_s22  }
  0x18   : > { %1904 = dma.hbm_to_vmem [thread:$0]  (!%p2334_p6), %s236_s18, 64, %s238_s12, [#allocation6]  }
  0x19   : > { %s2245_s30 = smov [#allocation10]   ;;  %s2246_s17 = smov [#allocation11]  }
  0x1a   : > { %s263_s11 = sshll.u32 %s2245_s30, 4  ;;  %s274_s18 = sshll.u32 %s2246_s17, 4  ;;  %s264_s11 = int_to_ptr.vmem [resolvable:$true] %s263_s11  ;;  %s275_s18 = int_to_ptr.vmem [resolvable:$true] %s274_s18 }
  0x1b   : > { %1910 = dma.hbm_to_vmem [thread:$0]  (!%p2334_p6), %s262_s29, 64, %s264_s11, [#allocation9]  }
  0x1c   : > { %s2247_s19 = smov 128   ;;  %s2248_s20 = smov 8  }
  0x1d   : > { %1913 = dma.hbm_to_vmem [thread:$0]  (!%p2334_p6), %s273_s16, 8192, %s275_s18, [#allocation12], %s2247_s19, %s2247_s19, %s2248_s20  }
  0x1e   : > { %s1846_s21 = sadd.s32 4294967294, %s2238_s27   ;;  %s2359_s22 = sadd.s32 1, %s2238_s27  }
  0x1f   : > { %s33_s23 = sadd.s32 1, %s2234_s26  ;;  %s30_s28 = ssub.s32 %s2238_s27, %s2359_s22 }
  0x20   : > { %p40_p7 = scmp.ne.s32.totalorder %s2234_s26, %s2230_s25  ;;  %p31_p8 = scmp.eq.s32.totalorder %s30_s28, 0 }
  0x21   : > { %p41_p9 = scmp.eq.s32.totalorder %s2238_s27, 0  ;;  %p46_p10 = scmp.ne.s32.totalorder %s2230_s25, %s2226_s24 }
  0x22   : > { %p196_p11 = scmp.eq.s32.totalorder %s2317_s8, 1  ;;  %p202_p2 = scmp.eq.s32.totalorder %s1846_s21, 1 }
  0x23   : > { %s2371_s29 = scalar_select %p31_p8, %s2234_s26, %s33_s23  }
  0x24   : > { %p2373_p12 = por %p41_p9, %p40_p7  ;;  %p2379_p13 = por %p47_p1, %p46_p10 }
  0x25   : > { %p2383_p0 = por %p196_p11, %p40_p7  ;;  %p1927_p4 = scmp.lt.s32.totalorder %s2238_s27, 2 }
  0x26   : > { %s291_s30 = sand.u32 1, %s2234_s26   ;;  %p2389_p6 = por %p202_p2, %p46_p10 }
  0x27   : > { %s1854_s13 = sshll.u32 %s291_s30, 6  ;;  %s1872_s14 = sshll.u32 %s2238_s27, 6 }
  0x28   : > { %s301_s18 = scalar_lea.hbm %s2663_s0, %s1872_s14  ;;  %s295_s20 = scalar_lea.vmem [#allocation2], %s1854_s13 }
  0x29   : > { %s302_s19 = sshll.u32 %s301_s18, 4  ;;  %s304_s23 = sshll.u32 %s295_s20, 4  ;;  %s303_s19 = int_to_ptr.hbm [resolvable:$true] %s302_s19  ;;  %s305_s23 = int_to_ptr.vmem [resolvable:$true] %s304_s23 }
  0x2a   : > { %p2399_p7 = pnand %p1927_p4, %p2373_p12  ;;  %s292_s28 = scalar_lea.sflag [#allocation3], %s291_s30 }
  0x2b   : > { %s2130_s1 = sshra.s32 %s303_s19, 4  ;;  %s2137_s16 = scalar_lea.hbm %s2663_s0, 128  ;;  %s2131_s1 = int_to_ptr.hbm [resolvable:$true] %s2130_s1 }
  0x2c   : > { %s2132_s2 = scalar_lea.hbm %s2131_s1, 64  ;;  %p2134_p9 = pneg %p2399_p7 }
  0x2d   : > { %p2133_p8 = scmp.ne.s32.totalorder %s2131_s1, %s2132_s2  ;;  %p2138_p12 = scmp.lt.s32.totalorder %s2131_s1, %s2663_s0 }
  0x2e   : > { %p2139_p2 = scmp.lt.s32.totalorder %s2137_s16, %s2132_s2 }
  0x2f   : > { %p2135_p10 = pnand %p2134_p9, %p2133_p8 }
  0x30   : > { %p2140_p4 = por %p2139_p2, %p2138_p12 }
  0x31   : > { %p2136_p11 = pneg %p2135_p10 }
  0x33   : > { %p2141_p5 = pnand %p2140_p4, %p2136_p11 }
  0x35   : > { %2144 = shalt.err (!%p2141_p5)
}
  0x36   : > { %s2249_s30 = smov 256   ;;  %s2250_s18 = smov 16  }
  0x37   : > { %1917 = dma.hbm_to_vmem [thread:$0]  (!%p2399_p7), %s303_s19, 1024, %s305_s23, %s292_s28, %s2249_s30, %s2249_s30, %s2250_s18  }
  0x38   : > { %316 = sbr.rel (%p2322_p3) target bundleno = 673 (0x2a1), region = 48  ;;  %s2416_s20 = sand.u32 (!%p2322_p3), 1, %s2230_s25  }
  0x39   : > { %s1859_s14 = sshll.u32 (!%p2322_p3), %s2416_s20, 6  ;;  %s319_s1 = scalar_lea.sflag (!%p2322_p3), [#allocation3], %s2416_s20 }
  0x3a   : > { %s2420_s2 = scalar_lea.vmem (!%p2322_p3), [#allocation2], %s1859_s14 }
  0x3d   : > { %2205 = dma.done.wait (%p2379_p13), %s319_s1, 1024  }
  0x3e   : > { %2207 = vsyncadd (%p2379_p13), %s319_s1, 4294966272 }
  0x3f   : > { %2209 = dma.done.wait (%p47_p1), [#allocation6], 16448  }
  0x40   : > { %2211 = vsyncadd (%p47_p1), [#allocation6], 4294950848 }
  0x41   : > { %2213 = dma.done.wait (%p47_p1), [#allocation9], 32832  }
  0x42   : > { %2215 = vsyncadd (%p47_p1), [#allocation9], 4294934464 }
  0x43   : > { %2217 = dma.done.wait (%p47_p1), [#allocation12], 8192  }
  0x44   : > { %2219 = vsyncadd (%p47_p1), [#allocation12], 4294959104  ;;  %v449_v0 = vld [vmem:[#allocation5 + $0x1e0] sm:$0xff]  ;;  %v450_v1 = vld [vmem:[#allocation5 + $0x1e8] sm:$0xff]  ;;  %s1865_s19 = sshll.u32 %s2416_s20, 5  ;;  %s1873_s21 = sshll.u32 %s2317_s8, 5 }
  0x45   : > { %v445_v2 = vld [vmem:[#allocation5 + $0x1c0] sm:$0xff]  ;;  %527 = vmatpush.msra.mxu0 %v449_v0  ;;  %585 = vmatpush.msra.mxu2 %v450_v1  ;;  %v446_v4 = vld [vmem:[#allocation5 + $0x1c8] sm:$0xff]  ;;  %v452_v63 = vld [vmem:[#allocation5 + $0x1f8] sm:$0xff]  ;;  %s378_s23 = scalar_lea.vmem [#allocation13], %s1865_s19  ;;  %s1721_s16 = scalar_lea.hbm %s2670_s7, %s1873_s21 }
  0x46   : > { %v513_v3 = vld [vmem:[#allocation5 + $0x3e0] sm:$0xff]  ;;  %v514_v5 = vld [vmem:[#allocation5 + $0x3e8] sm:$0xff]  ;;  %s1722_s17 = sshll.u32 %s378_s23, 4  ;;  %s1724_s10 = sshll.u32 %s1721_s16, 4  ;;  %s1723_s17 = int_to_ptr.vmem [resolvable:$true] %s1722_s17  ;;  %s1725_s10 = int_to_ptr.hbm [resolvable:$true] %s1724_s10 }
  0x47   : > { %556 = vmatpush.msra.mxu1 %v513_v3  ;;  %614 = vmatpush.msra.mxu3 %v514_v5  ;;  %v441_v6 = vld [vmem:[#allocation5 + $0x1a0] sm:$0xff]  ;;  %v442_v8 = vld [vmem:[#allocation5 + $0x1a8] sm:$0xff]  ;;  %v516_v5 = vld [vmem:[#allocation5 + $0x3f8] sm:$0xff]  ;;  %s1710_s8 = scalar_lea.sflag [#allocation4], %s2416_s20  ;;  %s2174_s30 = sshra.s32 %s1725_s10, 4  ;;  %s2175_s30 = int_to_ptr.hbm [resolvable:$true] %s2174_s30 }
  0x48   : > { %v509_v7 = vld [vmem:[#allocation5 + $0x3c0] sm:$0xff]  ;;  %528 = vmatpush.msra.mxu0 %v445_v2  ;;  %586 = vmatpush.msra.mxu2 %v446_v4  ;;  %v510_v9 = vld [vmem:[#allocation5 + $0x3c8] sm:$0xff]  ;;  %v451_v2 = vld [vmem:[#allocation5 + $0x1f0] sm:$0xff]  ;;  %s2176_s18 = scalar_lea.hbm %s2175_s30, 32  ;;  %p2181_p13 = scmp.lt.s32.totalorder %s2175_s30, %s2670_s7 }
  0x49   : > { %v505_v10 = vld [vmem:[#allocation5 + $0x3a0] sm:$0xff]  ;;  %557 = vmatpush.msra.mxu1 %v509_v7  ;;  %615 = vmatpush.msra.mxu3 %v510_v9  ;;  %v438_v12 = vld [vmem:[#allocation5 + $0x188] sm:$0xff]  ;;  %v448_v4 = vld [vmem:[#allocation5 + $0x1d8] sm:$0xff]  ;;  %p2177_p1 = scmp.ne.s32.totalorder %s2175_s30, %s2176_s18 }
  0x4a   : > { %v437_v11 = vld [vmem:[#allocation5 + $0x180] sm:$0xff]  ;;  %v506_v13 = vld [vmem:[#allocation5 + $0x3a8] sm:$0xff]  ;;  %529 = vmatpush.msra.mxu0 %v441_v6  ;;  %587 = vmatpush.msra.mxu2 %v442_v8  ;;  %v447_v6 = vld [vmem:[#allocation5 + $0x1d0] sm:$0xff] }
  0x4b   : > { %v501_v14 = vld [vmem:[#allocation5 + $0x380] sm:$0xff]  ;;  %v502_v15 = vld [vmem:[#allocation5 + $0x388] sm:$0xff]  ;;  %558 = vmatpush.msra.mxu1 %v505_v10  ;;  %616 = vmatpush.msra.mxu3 %v506_v13  ;;  %v515_v7 = vld [vmem:[#allocation5 + $0x3f0] sm:$0xff]  ;;  %p2178_p3 = pnand %p2177_p1, %p2383_p0 }
  0x4c   : > { %v433_v16 = vld [vmem:[#allocation5 + $0x160] sm:$0xff]  ;;  %v434_v17 = vld [vmem:[#allocation5 + $0x168] sm:$0xff]  ;;  %530 = vmatpush.msra.mxu0 %v437_v11  ;;  %588 = vmatpush.msra.mxu2 %v438_v12  ;;  %v444_v8 = vld [vmem:[#allocation5 + $0x1b8] sm:$0xff] }
  0x4d   : > { %v497_v18 = vld [vmem:[#allocation5 + $0x360] sm:$0xff]  ;;  %v498_v19 = vld [vmem:[#allocation5 + $0x368] sm:$0xff]  ;;  %559 = vmatpush.msra.mxu1 %v501_v14  ;;  %617 = vmatpush.msra.mxu3 %v502_v15  ;;  %v512_v9 = vld [vmem:[#allocation5 + $0x3d8] sm:$0xff]  ;;  %p2179_p5 = pneg %p2178_p3 }
  0x4e   : > { %v429_v20 = vld [vmem:[#allocation5 + $0x140] sm:$0xff]  ;;  %v430_v21 = vld [vmem:[#allocation5 + $0x148] sm:$0xff]  ;;  %531 = vmatpush.msra.mxu0 %v433_v16  ;;  %589 = vmatpush.msra.mxu2 %v434_v17  ;;  %v443_v10 = vld [vmem:[#allocation5 + $0x1b0] sm:$0xff] }
  0x4f   : > { %v493_v22 = vld [vmem:[#allocation5 + $0x340] sm:$0xff]  ;;  %v494_v23 = vld [vmem:[#allocation5 + $0x348] sm:$0xff]  ;;  %560 = vmatpush.msra.mxu1 %v497_v18  ;;  %618 = vmatpush.msra.mxu3 %v498_v19  ;;  %v511_v11 = vld [vmem:[#allocation5 + $0x3d0] sm:$0xff] }
  0x50   : > { %v425_v24 = vld [vmem:[#allocation5 + $0x120] sm:$0xff]  ;;  %v426_v25 = vld [vmem:[#allocation5 + $0x128] sm:$0xff]  ;;  %532 = vmatpush.msra.mxu0 %v429_v20  ;;  %590 = vmatpush.msra.mxu2 %v430_v21  ;;  %v440_v12 = vld [vmem:[#allocation5 + $0x198] sm:$0xff] }
  0x51   : > { %v489_v26 = vld [vmem:[#allocation5 + $0x320] sm:$0xff]  ;;  %v490_v27 = vld [vmem:[#allocation5 + $0x328] sm:$0xff]  ;;  %561 = vmatpush.msra.mxu1 %v493_v22  ;;  %619 = vmatpush.msra.mxu3 %v494_v23  ;;  %v508_v13 = vld [vmem:[#allocation5 + $0x3b8] sm:$0xff] }
  0x52   : > { %v421_v28 = vld [vmem:[#allocation5 + $0x100] sm:$0xff]  ;;  %v422_v29 = vld [vmem:[#allocation5 + $0x108] sm:$0xff]  ;;  %533 = vmatpush.msra.mxu0 %v425_v24  ;;  %591 = vmatpush.msra.mxu2 %v426_v25  ;;  %v439_v14 = vld [vmem:[#allocation5 + $0x190] sm:$0xff] }
  0x53   : > { %v485_v30 = vld [vmem:[#allocation5 + $0x300] sm:$0xff]  ;;  %v486_v31 = vld [vmem:[#allocation5 + $0x308] sm:$0xff]  ;;  %562 = vmatpush.msra.mxu1 %v489_v26  ;;  %620 = vmatpush.msra.mxu3 %v490_v27  ;;  %v507_v15 = vld [vmem:[#allocation5 + $0x3b0] sm:$0xff] }
  0x54   : > { %v417_v32 = vld [vmem:[#allocation5 + $0xe0] sm:$0xff]  ;;  %v418_v33 = vld [vmem:[#allocation5 + $0xe8] sm:$0xff]  ;;  %534 = vmatpush.msra.mxu0 %v421_v28  ;;  %592 = vmatpush.msra.mxu2 %v422_v29  ;;  %v2449_v16 = vld [vmem:[%s2420_s2 + $0x10] sm:$0xff] }
  0x55   : > { %v481_v34 = vld [vmem:[#allocation5 + $0x2e0] sm:$0xff]  ;;  %v482_v35 = vld [vmem:[#allocation5 + $0x2e8] sm:$0xff]  ;;  %563 = vmatpush.msra.mxu1 %v485_v30  ;;  %621 = vmatpush.msra.mxu3 %v486_v31  ;;  %v436_v17 = vld [vmem:[#allocation5 + $0x178] sm:$0xff] }
  0x56   : > { %v413_v36 = vld [vmem:[#allocation5 + $0xc0] sm:$0xff]  ;;  %v414_v37 = vld [vmem:[#allocation5 + $0xc8] sm:$0xff]  ;;  %535 = vmatpush.msra.mxu0 %v417_v32  ;;  %593 = vmatpush.msra.mxu2 %v418_v33  ;;  %v504_v18 = vld [vmem:[#allocation5 + $0x398] sm:$0xff] }
  0x57   : > { %v477_v38 = vld [vmem:[#allocation5 + $0x2c0] sm:$0xff]  ;;  %v478_v39 = vld [vmem:[#allocation5 + $0x2c8] sm:$0xff]  ;;  %564 = vmatpush.msra.mxu1 %v481_v34  ;;  %622 = vmatpush.msra.mxu3 %v482_v35  ;;  %v435_v19 = vld [vmem:[#allocation5 + $0x170] sm:$0xff] }
  0x58   : > { %v409_v40 = vld [vmem:[#allocation5 + $0xa0] sm:$0xff]  ;;  %v410_v41 = vld [vmem:[#allocation5 + $0xa8] sm:$0xff]  ;;  %536 = vmatpush.msra.mxu0 %v413_v36  ;;  %594 = vmatpush.msra.mxu2 %v414_v37  ;;  %v503_v20 = vld [vmem:[#allocation5 + $0x390] sm:$0xff] }
  0x59   : > { %v473_v42 = vld [vmem:[#allocation5 + $0x2a0] sm:$0xff]  ;;  %v474_v43 = vld [vmem:[#allocation5 + $0x2a8] sm:$0xff]  ;;  %565 = vmatpush.msra.mxu1 %v477_v38  ;;  %623 = vmatpush.msra.mxu3 %v478_v39  ;;  %v2454_v21 = vld [vmem:[%s2420_s2 + $0x18] sm:$0xff] }
  0x5a   : > { %v405_v44 = vld [vmem:[#allocation5 + $0x80] sm:$0xff]  ;;  %v406_v45 = vld [vmem:[#allocation5 + $0x88] sm:$0xff]  ;;  %537 = vmatpush.msra.mxu0 %v409_v40  ;;  %595 = vmatpush.msra.mxu2 %v410_v41  ;;  %v432_v22 = vld [vmem:[#allocation5 + $0x158] sm:$0xff] }
  0x5b   : > { %v469_v46 = vld [vmem:[#allocation5 + $0x280] sm:$0xff]  ;;  %v470_v47 = vld [vmem:[#allocation5 + $0x288] sm:$0xff]  ;;  %566 = vmatpush.msra.mxu1 %v473_v42  ;;  %624 = vmatpush.msra.mxu3 %v474_v43  ;;  %v500_v23 = vld [vmem:[#allocation5 + $0x378] sm:$0xff] }
  0x5c   : > { %v401_v48 = vld [vmem:[#allocation5 + $0x60] sm:$0xff]  ;;  %v402_v49 = vld [vmem:[#allocation5 + $0x68] sm:$0xff]  ;;  %538 = vmatpush.msra.mxu0 %v405_v44  ;;  %596 = vmatpush.msra.mxu2 %v406_v45  ;;  %v431_v24 = vld [vmem:[#allocation5 + $0x150] sm:$0xff] }
  0x5d   : > { %v465_v50 = vld [vmem:[#allocation5 + $0x260] sm:$0xff]  ;;  %v466_v51 = vld [vmem:[#allocation5 + $0x268] sm:$0xff]  ;;  %567 = vmatpush.msra.mxu1 %v469_v46  ;;  %625 = vmatpush.msra.mxu3 %v470_v47  ;;  %v499_v25 = vld [vmem:[#allocation5 + $0x370] sm:$0xff] }
  0x5e   : > { %v397_v52 = vld [vmem:[#allocation5 + $0x40] sm:$0xff]  ;;  %v398_v53 = vld [vmem:[#allocation5 + $0x48] sm:$0xff]  ;;  %539 = vmatpush.msra.mxu0 %v401_v48  ;;  %597 = vmatpush.msra.mxu2 %v402_v49  ;;  %v428_v26 = vld [vmem:[#allocation5 + $0x138] sm:$0xff] }
  0x5f   : > { %v461_v54 = vld [vmem:[#allocation5 + $0x240] sm:$0xff]  ;;  %v462_v55 = vld [vmem:[#allocation5 + $0x248] sm:$0xff]  ;;  %568 = vmatpush.msra.mxu1 %v465_v50  ;;  %626 = vmatpush.msra.mxu3 %v466_v51  ;;  %v496_v27 = vld [vmem:[#allocation5 + $0x358] sm:$0xff] }
  0x60   : > { %v393_v56 = vld [vmem:[#allocation5 + $0x20] sm:$0xff]  ;;  %v394_v57 = vld [vmem:[#allocation5 + $0x28] sm:$0xff]  ;;  %540 = vmatpush.msra.mxu0 %v397_v52  ;;  %598 = vmatpush.msra.mxu2 %v398_v53  ;;  %v427_v28 = vld [vmem:[#allocation5 + $0x130] sm:$0xff] }
  0x61   : > { %v457_v58 = vld [vmem:[#allocation5 + $0x220] sm:$0xff]  ;;  %v458_v59 = vld [vmem:[#allocation5 + $0x228] sm:$0xff]  ;;  %569 = vmatpush.msra.mxu1 %v461_v54  ;;  %627 = vmatpush.msra.mxu3 %v462_v55  ;;  %v495_v29 = vld [vmem:[#allocation5 + $0x350] sm:$0xff] }
  0x62   : > { %v389_v60 = vld [vmem:[#allocation5] sm:$0xff]  ;;  %v390_v61 = vld [vmem:[#allocation5 + $0x8] sm:$0xff]  ;;  %541 = vmatpush.msra.mxu0 %v393_v56  ;;  %599 = vmatpush.msra.mxu2 %v394_v57  ;;  %v424_v30 = vld [vmem:[#allocation5 + $0x118] sm:$0xff] }
  0x63   : > { %v2439_v62 = vld [vmem:[%s2420_s2] sm:$0xff]  ;;  %570 = vmatpush.msra.mxu1 %v457_v58  ;;  %628 = vmatpush.msra.mxu3 %v458_v59  ;;  %v454_v1 = vld [vmem:[#allocation5 + $0x208] sm:$0xff]  ;;  %v492_v31 = vld [vmem:[#allocation5 + $0x338] sm:$0xff] }
  0x64   : > { %v453_v0 = vld [vmem:[#allocation5 + $0x200] sm:$0xff]  ;;  %542 = vmatpush.msra.mxu0 %v389_v60  ;;  %600 = vmatpush.msra.mxu2 %v390_v61  ;;  %v2444_v3 = vld [vmem:[%s2420_s2 + $0x8] sm:$0xff]  ;;  %v423_v32 = vld [vmem:[#allocation5 + $0x110] sm:$0xff] }
  0x65   : > { %543 = vmatmul.f32.vlgmr.msra.gmra.mxu0 %v2439_v62  ;;  %601 = vmatmul.f32.vlgmr.msra.gmra.mxu2 %v2439_v62  ;;  %v491_v33 = vld [vmem:[#allocation5 + $0x330] sm:$0xff]  ;;  %v2459_v34 = vld [vmem:[%s2420_s2 + $0x20] sm:$0xff]  ;;  %v420_v35 = vld [vmem:[#allocation5 + $0xf8] sm:$0xff] }
  0x66   : > { %701 = vmatpush.msrb.mxu2 %v452_v63  ;;  %571 = vmatpush.msra.mxu1 %v453_v0  ;;  %v488_v36 = vld [vmem:[#allocation5 + $0x318] sm:$0xff]  ;;  %v419_v37 = vld [vmem:[#allocation5 + $0xf0] sm:$0xff]  ;;  %v2464_v39 = vld [vmem:[%s2420_s2 + $0x28] sm:$0xff] }
  0x67   : > { %629 = vmatpush.msra.mxu3 %v454_v1  ;;  %643 = vmatpush.msrb.mxu0 %v451_v2  ;;  %v487_v38 = vld [vmem:[#allocation5 + $0x310] sm:$0xff]  ;;  %v416_v40 = vld [vmem:[#allocation5 + $0xd8] sm:$0xff] }
  0x68   : > { %572 = vmatmul.f32.vlgmr.msra.gmra.mxu1 %v2444_v3  ;;  %630 = vmatmul.f32.vlgmr.msra.gmra.mxu3 %v2444_v3  ;;  %v484_v41 = vld [vmem:[#allocation5 + $0x2f8] sm:$0xff]  ;;  %v415_v42 = vld [vmem:[#allocation5 + $0xd0] sm:$0xff] }
  0x69   : > { %702 = vmatpush.msrb.mxu2 %v448_v4  ;;  %730 = vmatpush.msrb.mxu3 %v516_v5  ;;  %v483_v43 = vld [vmem:[#allocation5 + $0x2f0] sm:$0xff]  ;;  %v412_v44 = vld [vmem:[#allocation5 + $0xb8] sm:$0xff] }
  0x6a   : > { %644 = vmatpush.msrb.mxu0 %v447_v6  ;;  %672 = vmatpush.msrb.mxu1 %v515_v7  ;;  %v480_v45 = vld [vmem:[#allocation5 + $0x2d8] sm:$0xff]  ;;  %v411_v46 = vld [vmem:[#allocation5 + $0xb0] sm:$0xff] }
  0x6b   : > { %703 = vmatpush.msrb.mxu2 %v444_v8  ;;  %731 = vmatpush.msrb.mxu3 %v512_v9  ;;  %v479_v47 = vld [vmem:[#allocation5 + $0x2d0] sm:$0xff]  ;;  %v408_v48 = vld [vmem:[#allocation5 + $0x98] sm:$0xff] }
  0x6c   : > { %645 = vmatpush.msrb.mxu0 %v443_v10  ;;  %673 = vmatpush.msrb.mxu1 %v511_v11  ;;  %v476_v49 = vld [vmem:[#allocation5 + $0x2b8] sm:$0xff]  ;;  %v407_v50 = vld [vmem:[#allocation5 + $0x90] sm:$0xff]  ;;  %v835_v10 = vld [vmem:[#allocation8 + $0x1e0] sm:$0xff] }
  0x6d   : > { %704 = vmatpush.msrb.mxu2 %v440_v12  ;;  %732 = vmatpush.msrb.mxu3 %v508_v13  ;;  %v475_v51 = vld [vmem:[#allocation5 + $0x2b0] sm:$0xff]  ;;  %v404_v53 = vld [vmem:[#allocation5 + $0x78] sm:$0xff]  ;;  %v899_v11 = vld [vmem:[#allocation8 + $0x3e0] sm:$0xff] }
  0x6e   : > { %646 = vmatpush.msrb.mxu0 %v439_v14  ;;  %674 = vmatpush.msrb.mxu1 %v507_v15  ;;  %v2469_v52 = vld [vmem:[%s2420_s2 + $0x30] sm:$0xff]  ;;  %v472_v54 = vld [vmem:[#allocation5 + $0x298] sm:$0xff]  ;;  %v831_v12 = vld [vmem:[#allocation8 + $0x1c0] sm:$0xff] }
  0x6f   : > { %546 = vmatmul.f32.gmra.mxu0 %v2449_v16  ;;  %604 = vmatmul.f32.gmra.mxu2 %v2449_v16  ;;  %v403_v55 = vld [vmem:[#allocation5 + $0x70] sm:$0xff]  ;;  %v2474_v57 = vld [vmem:[%s2420_s2 + $0x38] sm:$0xff]  ;;  %v895_v13 = vld [vmem:[#allocation8 + $0x3c0] sm:$0xff]  ;;  %s2180_s2 = scalar_lea.hbm %s2670_s7, 64 }
  0x70   : > { %705 = vmatpush.msrb.mxu2 %v436_v17  ;;  %733 = vmatpush.msrb.mxu3 %v504_v18  ;;  %v471_v56 = vld [vmem:[#allocation5 + $0x290] sm:$0xff]  ;;  %v400_v58 = vld [vmem:[#allocation5 + $0x58] sm:$0xff]  ;;  %v827_v14 = vld [vmem:[#allocation8 + $0x1a0] sm:$0xff]  ;;  %p2182_p7 = scmp.lt.s32.totalorder %s2180_s2, %s2176_s18 }
  0x71   : > { %647 = vmatpush.msrb.mxu0 %v435_v19  ;;  %675 = vmatpush.msrb.mxu1 %v503_v20  ;;  %v468_v59 = vld [vmem:[#allocation5 + $0x278] sm:$0xff]  ;;  %v399_v60 = vld [vmem:[#allocation5 + $0x50] sm:$0xff]  ;;  %v891_v15 = vld [vmem:[#allocation8 + $0x3a0] sm:$0xff] }
  0x72   : > { %575 = vmatmul.f32.gmra.mxu1 %v2454_v21  ;;  %633 = vmatmul.f32.gmra.mxu3 %v2454_v21  ;;  %v467_v61 = vld [vmem:[#allocation5 + $0x270] sm:$0xff]  ;;  %v396_v63 = vld [vmem:[#allocation5 + $0x38] sm:$0xff]  ;;  %v823_v17 = vld [vmem:[#allocation8 + $0x180] sm:$0xff]  ;;  %p2183_p8 = por %p2182_p7, %p2181_p13 }
  0x73   : > { %706 = vmatpush.msrb.mxu2 %v432_v22  ;;  %734 = vmatpush.msrb.mxu3 %v500_v23  ;;  %v464_v0 = vld [vmem:[#allocation5 + $0x258] sm:$0xff]  ;;  %v395_v1 = vld [vmem:[#allocation5 + $0x30] sm:$0xff]  ;;  %v887_v18 = vld [vmem:[#allocation8 + $0x380] sm:$0xff] }
  0x74   : > { %648 = vmatpush.msrb.mxu0 %v431_v24  ;;  %676 = vmatpush.msrb.mxu1 %v499_v25  ;;  %v463_v2 = vld [vmem:[#allocation5 + $0x250] sm:$0xff]  ;;  %v392_v4 = vld [vmem:[#allocation5 + $0x18] sm:$0xff]  ;;  %v883_v19 = vld [vmem:[#allocation8 + $0x360] sm:$0xff]  ;;  %p2184_p9 = pnand %p2183_p8, %p2179_p5 }
  0x75   : > { %707 = vmatpush.msrb.mxu2 %v428_v26  ;;  %735 = vmatpush.msrb.mxu3 %v496_v27  ;;  %v460_v5 = vld [vmem:[#allocation5 + $0x238] sm:$0xff]  ;;  %v391_v6 = vld [vmem:[#allocation5 + $0x10] sm:$0xff]  ;;  %v879_v20 = vld [vmem:[#allocation8 + $0x340] sm:$0xff] }
  0x76   : > { %649 = vmatpush.msrb.mxu0 %v427_v28  ;;  %677 = vmatpush.msrb.mxu1 %v495_v29  ;;  %v459_v7 = vld [vmem:[#allocation5 + $0x230] sm:$0xff]  ;;  %v456_v8 = vld [vmem:[#allocation5 + $0x218] sm:$0xff]  ;;  %v811_v22 = vld [vmem:[#allocation8 + $0x120] sm:$0xff] }
  0x77   : > { %708 = vmatpush.msrb.mxu2 %v424_v30  ;;  %736 = vmatpush.msrb.mxu3 %v492_v31  ;;  %v455_v9 = vld [vmem:[#allocation5 + $0x210] sm:$0xff]  ;;  %v875_v23 = vld [vmem:[#allocation8 + $0x320] sm:$0xff] }
  0x78   : > { %650 = vmatpush.msrb.mxu0 %v423_v32  ;;  %678 = vmatpush.msrb.mxu1 %v491_v33  ;;  %v807_v24 = vld [vmem:[#allocation8 + $0x100] sm:$0xff] }
  0x79   : > { %549 = vmatmul.f32.gmra.mxu0 %v2459_v34  ;;  %607 = vmatmul.f32.gmra.mxu2 %v2459_v34  ;;  %v871_v25 = vld [vmem:[#allocation8 + $0x300] sm:$0xff] }
  0x7a   : > { %709 = vmatpush.msrb.mxu2 %v420_v35  ;;  %737 = vmatpush.msrb.mxu3 %v488_v36  ;;  %v867_v26 = vld [vmem:[#allocation8 + $0x2e0] sm:$0xff] }
  0x7b   : > { %651 = vmatpush.msrb.mxu0 %v419_v37  ;;  %679 = vmatpush.msrb.mxu1 %v487_v38  ;;  %v795_v27 = vld [vmem:[#allocation8 + $0xa0] sm:$0xff] }
  0x7c   : > { %578 = vmatmul.f32.gmra.mxu1 %v2464_v39  ;;  %636 = vmatmul.f32.gmra.mxu3 %v2464_v39  ;;  %v791_v28 = vld [vmem:[#allocation8 + $0x80] sm:$0xff] }
  0x7d   : > { %710 = vmatpush.msrb.mxu2 %v416_v40  ;;  %738 = vmatpush.msrb.mxu3 %v484_v41  ;;  %v787_v29 = vld [vmem:[#allocation8 + $0x60] sm:$0xff] }
  0x7e   : > { %652 = vmatpush.msrb.mxu0 %v415_v42  ;;  %680 = vmatpush.msrb.mxu1 %v483_v43  ;;  %v863_v30 = vld [vmem:[#allocation8 + $0x2c0] sm:$0xff]  ;;  %v832_v42 = vld [vmem:[#allocation8 + $0x1c8] sm:$0xff] }
  0x7f   : > { %711 = vmatpush.msrb.mxu2 %v412_v44  ;;  %739 = vmatpush.msrb.mxu3 %v480_v45  ;;  %v783_v31 = vld [vmem:[#allocation8 + $0x40] sm:$0xff]  ;;  %v828_v45 = vld [vmem:[#allocation8 + $0x1a8] sm:$0xff] }
  0x80   : > { %653 = vmatpush.msrb.mxu0 %v411_v46  ;;  %681 = vmatpush.msrb.mxu1 %v479_v47  ;;  %v859_v32 = vld [vmem:[#allocation8 + $0x2a0] sm:$0xff] }
  0x81   : > { %712 = vmatpush.msrb.mxu2 %v408_v48  ;;  %740 = vmatpush.msrb.mxu3 %v476_v49  ;;  %v779_v33 = vld [vmem:[#allocation8 + $0x20] sm:$0xff]  ;;  %v824_v48 = vld [vmem:[#allocation8 + $0x188] sm:$0xff] }
  0x82   : > { %654 = vmatpush.msrb.mxu0 %v407_v50  ;;  %682 = vmatpush.msrb.mxu1 %v475_v51  ;;  %v775_v35 = vld [vmem:[#allocation8] sm:$0xff]  ;;  %v900_v49 = vld [vmem:[#allocation8 + $0x3e8] sm:$0xff] }
  0x83   : > { %552 = vmatmul.f32.gmra.mxu0 %v2469_v52  ;;  %610 = vmatmul.f32.gmra.mxu2 %v2469_v52  ;;  %v851_v36 = vld [vmem:[#allocation8 + $0x260] sm:$0xff] }
  0x84   : > { %713 = vmatpush.msrb.mxu2 %v404_v53  ;;  %741 = vmatpush.msrb.mxu3 %v472_v54  ;;  %v847_v37 = vld [vmem:[#allocation8 + $0x240] sm:$0xff]  ;;  %v896_v53 = vld [vmem:[#allocation8 + $0x3c8] sm:$0xff] }
  0x85   : > { %655 = vmatpush.msrb.mxu0 %v403_v55  ;;  %683 = vmatpush.msrb.mxu1 %v471_v56  ;;  %v963_v38 = vld [vmem:[#allocation8 + $0x5e0] sm:$0xff]  ;;  %v2494_v55 = vld [vmem:[#allocation7] sm:$0xf] }
  0x86   : > { %581 = vmatmul.f32.gmra.mxu1 %v2474_v57  ;;  %639 = vmatmul.f32.gmra.mxu3 %v2474_v57  ;;  %v843_v40 = vld [vmem:[#allocation8 + $0x220] sm:$0xff] }
  0x87   : > { %714 = vmatpush.msrb.mxu2 %v400_v58  ;;  %742 = vmatpush.msrb.mxu3 %v468_v59  ;;  %v959_v41 = vld [vmem:[#allocation8 + $0x5c0] sm:$0xff]  ;;  %v892_v58 = vld [vmem:[#allocation8 + $0x3a8] sm:$0xff] }
  0x88   : > { %656 = vmatpush.msrb.mxu0 %v399_v60  ;;  %684 = vmatpush.msrb.mxu1 %v467_v61  ;;  %v839_v43 = vld [vmem:[#allocation8 + $0x200] sm:$0xff]  ;;  %v812_v61 = vld [vmem:[#allocation8 + $0x128] sm:$0xff] }
  0x89   : > { %715 = vmatpush.msrb.mxu2 %v396_v63  ;;  %743 = vmatpush.msrb.mxu3 %v464_v0  ;;  %v955_v44 = vld [vmem:[#allocation8 + $0x5a0] sm:$0xff]  ;;  %v888_v63 = vld [vmem:[#allocation8 + $0x388] sm:$0xff] }
  0x8a   : > { %657 = vmatpush.msrb.mxu0 %v395_v1  ;;  %685 = vmatpush.msrb.mxu1 %v463_v2  ;;  %v1027_v46 = vld [vmem:[#allocation8 + $0x7e0] sm:$0xff]  ;;  %v808_v2 = vld [vmem:[#allocation8 + $0x108] sm:$0xff] }
  0x8b   : > { %716 = vmatpush.msrb.mxu2 %v392_v4  ;;  %744 = vmatpush.msrb.mxu3 %v460_v5  ;;  %v951_v47 = vld [vmem:[#allocation8 + $0x580] sm:$0xff]  ;;  %v884_v4 = vld [vmem:[#allocation8 + $0x368] sm:$0xff] }
  0x8c   : > { %658 = vmatpush.msrb.mxu0 %v391_v6  ;;  %686 = vmatpush.msrb.mxu1 %v459_v7  ;;  %v1023_v50 = vld [vmem:[#allocation8 + $0x7c0] sm:$0xff]  ;;  %v2497_v6 = vperm.slane %v2494_v55, 0 }
  0x8d   : > { %659 = vmatmul.f32.vlgmr.msrb.gmra.mxu0 %v2439_v62  ;;  %717 = vmatmul.f32.vlgmr.msrb.gmra.mxu2 %v2439_v62  ;;  %v819_v62 = vld [vmem:[#allocation8 + $0x160] sm:$0xff] }
  0x8e   : > { %745 = vmatpush.msrb.mxu3 %v456_v8  ;;  %687 = vmatpush.msrb.mxu1 %v455_v9  ;;  %v947_v51 = vld [vmem:[#allocation8 + $0x560] sm:$0xff]  ;;  %v804_v8 = vld [vmem:[#allocation8 + $0xe8] sm:$0xff] }
  0x8f   : > { %688 = vmatmul.f32.vlgmr.msrb.gmra.mxu1 %v2444_v3  ;;  %746 = vmatmul.f32.vlgmr.msrb.gmra.mxu3 %v2444_v3  ;;  %v815_v3 = vld [vmem:[#allocation8 + $0x140] sm:$0xff]  ;;  %v880_v9 = vld [vmem:[#allocation8 + $0x348] sm:$0xff] }
  0x90   : > { %1041 = vmatpush.msra.mxu0 %v835_v10  ;;  %1070 = vmatpush.msra.mxu1 %v899_v11  ;;  %v1019_v54 = vld [vmem:[#allocation8 + $0x7a0] sm:$0xff] }
  0x91   : > { %1099 = vmatpush.msra.mxu2 %v963_v38  ;;  %1128 = vmatpush.msra.mxu3 %v1027_v46  ;;  %v943_v56 = vld [vmem:[#allocation8 + $0x540] sm:$0xff]  ;;  %v860_v38 = vld [vmem:[#allocation8 + $0x2a8] sm:$0xff] }
  0x92   : > { %1042 = vmatpush.msra.mxu0 %v831_v12  ;;  %1071 = vmatpush.msra.mxu1 %v895_v13  ;;  %v1015_v59 = vld [vmem:[#allocation8 + $0x780] sm:$0xff] }
  0x93   : > { %1100 = vmatpush.msra.mxu2 %v959_v41  ;;  %1129 = vmatpush.msra.mxu3 %v1023_v50  ;;  %v939_v60 = vld [vmem:[#allocation8 + $0x520] sm:$0xff]  ;;  %v852_v50 = vld [vmem:[#allocation8 + $0x268] sm:$0xff] }
  0x94   : > { %1043 = vmatpush.msra.mxu0 %v827_v14  ;;  %1072 = vmatpush.msra.mxu1 %v891_v15  ;;  %v1011_v0 = vld [vmem:[#allocation8 + $0x760] sm:$0xff]  ;;  %v800_v14 = vld [vmem:[#allocation8 + $0xc8] sm:$0xff] }
  0x95   : > { %662 = vmatmul.f32.gmra.mxu0 %v2449_v16  ;;  %720 = vmatmul.f32.gmra.mxu2 %v2449_v16  ;;  %v803_v16 = vld [vmem:[#allocation8 + $0xe0] sm:$0xff]  ;;  %v876_v15 = vld [vmem:[#allocation8 + $0x328] sm:$0xff] }
  0x96   : > { %1044 = vmatpush.msra.mxu0 %v823_v17  ;;  %1073 = vmatpush.msra.mxu1 %v887_v18  ;;  %v935_v1 = vld [vmem:[#allocation8 + $0x500] sm:$0xff]  ;;  %v2501_v18 = vperm.slane %v2494_v55, 1 }
  0x97   : > { %691 = vmatmul.f32.gmra.mxu1 %v2454_v21  ;;  %749 = vmatmul.f32.gmra.mxu3 %v2454_v21  ;;  %v799_v21 = vld [vmem:[#allocation8 + $0xc0] sm:$0xff] }
  0x98   : > { %1045 = vmatpush.msra.mxu0 %v819_v62  ;;  %1074 = vmatpush.msra.mxu1 %v883_v19  ;;  %v1007_v5 = vld [vmem:[#allocation8 + $0x740] sm:$0xff] }
  0x99   : > { %1101 = vmatpush.msra.mxu2 %v955_v44  ;;  %1130 = vmatpush.msra.mxu3 %v1019_v54  ;;  %v931_v7 = vld [vmem:[#allocation8 + $0x4e0] sm:$0xff]  ;;  %v856_v44 = vld [vmem:[#allocation8 + $0x288] sm:$0xff] }
  0x9a   : > { %1046 = vmatpush.msra.mxu0 %v815_v3  ;;  %1075 = vmatpush.msra.mxu1 %v879_v20  ;;  %v1003_v11 = vld [vmem:[#allocation8 + $0x720] sm:$0xff]  ;;  %v796_v3 = vld [vmem:[#allocation8 + $0xa8] sm:$0xff] }
  0x9b   : > { %1102 = vmatpush.msra.mxu2 %v951_v47  ;;  %1131 = vmatpush.msra.mxu3 %v1015_v59  ;;  %v927_v13 = vld [vmem:[#allocation8 + $0x4c0] sm:$0xff] }
  0x9c   : > { %1047 = vmatpush.msra.mxu0 %v811_v22  ;;  %1076 = vmatpush.msra.mxu1 %v875_v23  ;;  %v999_v62 = vld [vmem:[#allocation8 + $0x700] sm:$0xff]  ;;  %v872_v22 = vld [vmem:[#allocation8 + $0x308] sm:$0xff] }
  0x9d   : > { %665 = vmatmul.f32.gmra.mxu0 %v2459_v34  ;;  %723 = vmatmul.f32.gmra.mxu2 %v2459_v34  ;;  %v855_v34 = vld [vmem:[#allocation8 + $0x280] sm:$0xff] }
  0x9e   : > { %1048 = vmatpush.msra.mxu0 %v807_v24  ;;  %1077 = vmatpush.msra.mxu1 %v871_v25  ;;  %v923_v19 = vld [vmem:[#allocation8 + $0x4a0] sm:$0xff]  ;;  %v792_v25 = vld [vmem:[#allocation8 + $0x88] sm:$0xff] }
  0x9f   : > { %694 = vmatmul.f32.gmra.mxu1 %v2464_v39  ;;  %752 = vmatmul.f32.gmra.mxu3 %v2464_v39  ;;  %v836_v39 = vld [vmem:[#allocation8 + $0x1e8] sm:$0xff]  ;;  %v995_v23 = vld [vmem:[#allocation8 + $0x6e0] sm:$0xff] }
  0xa0   : > { %1049 = vmatpush.msra.mxu0 %v803_v16  ;;  %1078 = vmatpush.msra.mxu1 %v867_v26  ;;  %v919_v24 = vld [vmem:[#allocation8 + $0x480] sm:$0xff]  ;;  %v868_v16 = vld [vmem:[#allocation8 + $0x2e8] sm:$0xff] }
  0xa1   : > { %1103 = vmatpush.msra.mxu2 %v947_v51  ;;  %1132 = vmatpush.msra.mxu3 %v1011_v0  ;;  %v907_v41 = vld [vmem:[#allocation8 + $0x420] sm:$0xff] }
  0xa2   : > { %1050 = vmatpush.msra.mxu0 %v799_v21  ;;  %1079 = vmatpush.msra.mxu1 %v863_v30  ;;  %v788_v30 = vld [vmem:[#allocation8 + $0x68] sm:$0xff]  ;;  %v979_v46 = vld [vmem:[#allocation8 + $0x660] sm:$0xff] }
  0xa3   : > { %1104 = vmatpush.msra.mxu2 %v943_v56  ;;  %1133 = vmatpush.msra.mxu3 %v1007_v5  ;;  %v903_v47 = vld [vmem:[#allocation8 + $0x400] sm:$0xff]  ;;  %v848_v56 = vld [vmem:[#allocation8 + $0x248] sm:$0xff] }
  0xa4   : > { %1051 = vmatpush.msra.mxu0 %v795_v27  ;;  %1080 = vmatpush.msra.mxu1 %v859_v32  ;;  %v991_v27 = vld [vmem:[#allocation8 + $0x6c0] sm:$0xff] }
  0xa5   : > { %668 = vmatmul.f32.gmra.mxu0 %v2469_v52  ;;  %726 = vmatmul.f32.gmra.mxu2 %v2469_v52  ;;  %v820_v52 = vld [vmem:[#allocation8 + $0x168] sm:$0xff]  ;;  %v975_v51 = vld [vmem:[#allocation8 + $0x640] sm:$0xff] }
  0xa6   : > { %1052 = vmatpush.msra.mxu0 %v791_v28  ;;  %1081 = vmatpush.msra.mxu1 %v855_v34  ;;  %v911_v34 = vld [vmem:[#allocation8 + $0x440] sm:$0xff] }
  0xa7   : > { %697 = vmatmul.f32.gmra.mxu1 %v2474_v57  ;;  %755 = vmatmul.f32.gmra.mxu3 %v2474_v57  ;;  %v816_v57 = vld [vmem:[#allocation8 + $0x148] sm:$0xff]  ;;  %v971_v59 = vld [vmem:[#allocation8 + $0x620] sm:$0xff] }
  0xa8   : > { %1053 = vmatpush.msra.mxu0 %v787_v29  ;;  %1082 = vmatpush.msra.mxu1 %v851_v36  ;;  %v915_v29 = vld [vmem:[#allocation8 + $0x460] sm:$0xff] }
  0xa9   : > { %1105 = vmatpush.msra.mxu2 %v939_v60  ;;  %1134 = vmatpush.msra.mxu3 %v1003_v11  ;;  %v960_v60 = vld [vmem:[#allocation8 + $0x5c8] sm:$0xff] }
  0xaa   : > { %1054 = vmatpush.msra.mxu0 %v783_v31  ;;  %1083 = vmatpush.msra.mxu1 %v847_v37  ;;  %v864_v31 = vld [vmem:[#allocation8 + $0x2c8] sm:$0xff] }
  0xab   : > { %1106 = vmatpush.msra.mxu2 %v935_v1  ;;  %1135 = vmatpush.msra.mxu3 %v999_v62  ;;  %v967_v1 = vld [vmem:[#allocation8 + $0x600] sm:$0xff]  ;;  %v952_v11 = vld [vmem:[#allocation8 + $0x588] sm:$0xff] }
  0xac   : > { %1055 = vmatpush.msra.mxu0 %v779_v33  ;;  %1084 = vmatpush.msra.mxu1 %v843_v40  ;;  %v987_v33 = vld [vmem:[#allocation8 + $0x6a0] sm:$0xff]  ;;  %v948_v62 = vld [vmem:[#allocation8 + $0x568] sm:$0xff] }
  0xad   : > { %1107 = vmatpush.msra.mxu2 %v931_v7  ;;  %1136 = vmatpush.msra.mxu3 %v995_v23  ;;  %v983_v40 = vld [vmem:[#allocation8 + $0x680] sm:$0xff]  ;;  %v840_v7 = vld [vmem:[#allocation8 + $0x208] sm:$0xff] }
  0xae   : > { %1056 = vmatpush.msra.mxu0 %v775_v35  ;;  %1085 = vmatpush.msra.mxu1 %v839_v43  ;;  %v784_v35 = vld [vmem:[#allocation8 + $0x48] sm:$0xff] }
  0xaf   : > { %1108 = vmatpush.msra.mxu2 %v927_v13  ;;  %1137 = vmatpush.msra.mxu3 %v991_v27  ;;  %v825_v13 = vld [vmem:[#allocation8 + $0x190] sm:$0xff] }
  0xb0   : > { %1157 = vmatpush.msrb.mxu0 %v836_v39  ;;  %1186 = vmatpush.msrb.mxu1 %v900_v49  ;;  %v893_v27 = vld [vmem:[#allocation8 + $0x3b0] sm:$0xff] }
  0xb1   : > { %1109 = vmatpush.msra.mxu2 %v923_v19  ;;  %1138 = vmatpush.msra.mxu3 %v987_v33  ;;  %v1012_v33 = vld [vmem:[#allocation8 + $0x768] sm:$0xff] }
  0xb2   : > { %1158 = vmatpush.msrb.mxu0 %v832_v42  ;;  %1187 = vmatpush.msrb.mxu1 %v896_v53  ;;  %v780_v42 = vld [vmem:[#allocation8 + $0x28] sm:$0xff] }
  0xb3   : > { %1110 = vmatpush.msra.mxu2 %v919_v24  ;;  %1139 = vmatpush.msra.mxu3 %v983_v40 }
  0xb4   : > { %1159 = vmatpush.msrb.mxu0 %v828_v45  ;;  %1188 = vmatpush.msrb.mxu1 %v892_v58 }
  0xb5   : > { %1111 = vmatpush.msra.mxu2 %v915_v29  ;;  %1140 = vmatpush.msra.mxu3 %v979_v46  ;;  %v940_v29 = vld [vmem:[#allocation8 + $0x528] sm:$0xff] }
  0xb6   : > { %1160 = vmatpush.msrb.mxu0 %v824_v48  ;;  %1189 = vmatpush.msrb.mxu1 %v888_v63  ;;  %v776_v48 = vld [vmem:[#allocation8 + $0x8] sm:$0xff]  ;;  %v833_v63 = vld [vmem:[#allocation8 + $0x1d0] sm:$0xff] }
  0xb7   : > { %1112 = vmatpush.msra.mxu2 %v911_v34  ;;  %1141 = vmatpush.msra.mxu3 %v975_v51  ;;  %v1004_v46 = vld [vmem:[#allocation8 + $0x728] sm:$0xff] }
  0xb8   : > { %1161 = vmatpush.msrb.mxu0 %v820_v52  ;;  %1190 = vmatpush.msrb.mxu1 %v884_v4  ;;  %v964_v52 = vld [vmem:[#allocation8 + $0x5e8] sm:$0xff] }
  0xb9   : > { %1113 = vmatpush.msra.mxu2 %v907_v41  ;;  %1142 = vmatpush.msra.mxu3 %v971_v59  ;;  %v885_v41 = vld [vmem:[#allocation8 + $0x370] sm:$0xff]  ;;  %v996_v59 = vld [vmem:[#allocation8 + $0x6e8] sm:$0xff] }
  0xba   : > { %1162 = vmatpush.msrb.mxu0 %v816_v57  ;;  %1191 = vmatpush.msrb.mxu1 %v880_v9  ;;  %v837_v57 = vld [vmem:[#allocation8 + $0x1f0] sm:$0xff] }
  0xbb   : > { %1114 = vmatpush.msra.mxu2 %v903_v47  ;;  %1143 = vmatpush.msra.mxu3 %v967_v1  ;;  %v992_v1 = vld [vmem:[#allocation8 + $0x6c8] sm:$0xff] }
  0xbc   : > { %1163 = vmatpush.msrb.mxu0 %v812_v61  ;;  %1192 = vmatpush.msrb.mxu1 %v876_v15  ;;  %v844_v61 = vld [vmem:[#allocation8 + $0x228] sm:$0xff] }
  0xbd   : > { %1215 = vmatpush.msrb.mxu2 %v964_v52  ;;  %v801_v52 = vld [vmem:[#allocation8 + $0xd0] sm:$0xff] }
  0xbe   : > { %1164 = vmatpush.msrb.mxu0 %v808_v2  ;;  %1193 = vmatpush.msrb.mxu1 %v872_v22  ;;  %v956_v2 = vld [vmem:[#allocation8 + $0x5a8] sm:$0xff] }
  0xbf   : > { %1216 = vmatpush.msrb.mxu2 %v960_v60  ;;  %v1020_v22 = vld [vmem:[#allocation8 + $0x7a8] sm:$0xff]  ;;  %v797_v60 = vld [vmem:[#allocation8 + $0xb0] sm:$0xff] }
  0xc0   : > { %1165 = vmatpush.msrb.mxu0 %v804_v8  ;;  %1194 = vmatpush.msrb.mxu1 %v868_v16  ;;  %v829_v8 = vld [vmem:[#allocation8 + $0x1b0] sm:$0xff] }
  0xc1   : > { %1217 = vmatpush.msrb.mxu2 %v956_v2  ;;  %v817_v16 = vld [vmem:[#allocation8 + $0x150] sm:$0xff] }
  0xc2   : > { %1166 = vmatpush.msrb.mxu0 %v800_v14  ;;  %1195 = vmatpush.msrb.mxu1 %v864_v31  ;;  %v901_v14 = vld [vmem:[#allocation8 + $0x3f0] sm:$0xff] }
  0xc3   : > { %1218 = vmatpush.msrb.mxu2 %v952_v11  ;;  %v789_v11 = vld [vmem:[#allocation8 + $0x70] sm:$0xff] }
  0xc4   : > { %1167 = vmatpush.msrb.mxu0 %v796_v3  ;;  %1196 = vmatpush.msrb.mxu1 %v860_v38  ;;  %v821_v3 = vld [vmem:[#allocation8 + $0x170] sm:$0xff] }
  0xc5   : > { %1219 = vmatpush.msrb.mxu2 %v948_v62  ;;  %v785_v62 = vld [vmem:[#allocation8 + $0x50] sm:$0xff] }
  0xc6   : > { %1168 = vmatpush.msrb.mxu0 %v792_v25  ;;  %1197 = vmatpush.msrb.mxu1 %v856_v44  ;;  %v944_v25 = vld [vmem:[#allocation8 + $0x548] sm:$0xff] }
  0xc7   : > { %1220 = vmatpush.msrb.mxu2 %v944_v25 }
  0xc8   : > { %1169 = vmatpush.msrb.mxu0 %v788_v30  ;;  %1198 = vmatpush.msrb.mxu1 %v852_v50  ;;  %v813_v30 = vld [vmem:[#allocation8 + $0x130] sm:$0xff] }
  0xc9   : > { %1221 = vmatpush.msrb.mxu2 %v940_v29  ;;  %v980_v29 = vld [vmem:[#allocation8 + $0x668] sm:$0xff] }
  0xca   : > { %1170 = vmatpush.msrb.mxu0 %v784_v35  ;;  %1199 = vmatpush.msrb.mxu1 %v848_v56 }
  0xcc   : > { %1171 = vmatpush.msrb.mxu0 %v780_v42  ;;  %1200 = vmatpush.msrb.mxu1 %v844_v61  ;;  %v932_v42 = vld [vmem:[#allocation8 + $0x4e8] sm:$0xff]  ;;  %v873_v61 = vld [vmem:[#allocation8 + $0x310] sm:$0xff] }
  0xce   : > { %1172 = vmatpush.msrb.mxu0 %v776_v48  ;;  %1201 = vmatpush.msrb.mxu1 %v840_v7  ;;  %v881_v48 = vld [vmem:[#allocation8 + $0x350] sm:$0xff] }
  0xe2   : > { %v544_v10 = vpop.f32.mrf.mxu0 }
  0xe3   : > { %v545_v12 = vadd.f32 %v544_v10, %v2497_v6  ;;  %v1028_v10 = vld [vmem:[#allocation8 + $0x7e8] sm:$0xff] }
  0xe4   : > { %1244 = vmatpush.msrb.mxu3 %v1028_v10 }
  0xe5   : > { %v573_v17 = vpop.f32.mrf.mxu1 }
  0xe6   : > { %v574_v20 = vadd.f32 %v573_v17, %v545_v12  ;;  %v1024_v17 = vld [vmem:[#allocation8 + $0x7c8] sm:$0xff] }
  0xe7   : > { %1245 = vmatpush.msrb.mxu3 %v1024_v17  ;;  %v988_v17 = vld [vmem:[#allocation8 + $0x6a8] sm:$0xff] }
  0xe8   : > { %v2503_v26 = vmax.f32 %v574_v20, 0.0  ;;  %v602_v21 = vpop.f32.mrf.mxu2  ;;  %v897_v20 = vld [vmem:[#allocation8 + $0x3d0] sm:$0xff] }
  0xe9   : > { %v603_v28 = vadd.f32 %v602_v21, %v2501_v18  ;;  %1246 = vmatpush.msrb.mxu3 %v1020_v22 }
  0xea   : > { %1057 = vmatmul.f32.vlgmr.msra.gmra.mxu0 %v2503_v26 }
  0xeb   : > { %v631_v32 = vpop.f32.mrf.mxu3  ;;  %1273 = vmatpush.msra.mxu0 %v837_v57  ;;  %v2531_v57 = vperm.slane %v2494_v55, 2 }
  0xec   : > { %v547_v36 = vpop.f32.mrf.mxu0  ;;  %v632_v37 = vadd.f32 %v631_v32, %v603_v28  ;;  %v1016_v28 = vld [vmem:[#allocation8 + $0x788] sm:$0xff]  ;;  %v889_v32 = vld [vmem:[#allocation8 + $0x390] sm:$0xff] }
  0xed   : > { %v548_v39 = vadd.f32 %v547_v36, %v2497_v6  ;;  %1274 = vmatpush.msra.mxu0 %v833_v63  ;;  %1247 = vmatpush.msrb.mxu3 %v1016_v28  ;;  %v936_v36 = vld [vmem:[#allocation8 + $0x508] sm:$0xff] }
  0xee   : > { %v2508_v43 = vmax.f32 %v632_v37, 0.0  ;;  %v809_v37 = vld [vmem:[#allocation8 + $0x110] sm:$0xff]  ;;  %1222 = vmatpush.msrb.mxu2 %v936_v36 }
  0xef   : > { %v576_v45 = vpop.f32.mrf.mxu1  ;;  %1275 = vmatpush.msra.mxu0 %v829_v8  ;;  %1248 = vmatpush.msrb.mxu3 %v1012_v33  ;;  %v916_v8 = vld [vmem:[#allocation8 + $0x468] sm:$0xff] }
  0xf0   : > { %v577_v49 = vadd.f32 %v576_v45, %v548_v39  ;;  %1086 = vmatmul.f32.vlgmr.msra.gmra.mxu1 %v2508_v43  ;;  %v1008_v39 = vld [vmem:[#allocation8 + $0x748] sm:$0xff]  ;;  %v805_v45 = vld [vmem:[#allocation8 + $0xf0] sm:$0xff]  ;;  %1223 = vmatpush.msrb.mxu2 %v932_v42 }
  0xf1   : > { %1276 = vmatpush.msra.mxu0 %v825_v13  ;;  %1302 = vmatpush.msra.mxu1 %v901_v14  ;;  %v865_v13 = vld [vmem:[#allocation8 + $0x2d0] sm:$0xff]  ;;  %v904_v33 = vld [vmem:[#allocation8 + $0x408] sm:$0xff] }
  0xf2   : > { %v2511_v53 = vmax.f32 %v577_v49, 0.0  ;;  %v605_v54 = vpop.f32.mrf.mxu2  ;;  %1249 = vmatpush.msrb.mxu3 %v1008_v39  ;;  %v1000_v49 = vld [vmem:[#allocation8 + $0x708] sm:$0xff]  ;;  %v849_v39 = vld [vmem:[#allocation8 + $0x250] sm:$0xff] }
  0xf3   : > { %v606_v58 = vadd.f32 %v605_v54, %v2501_v18  ;;  %1277 = vmatpush.msra.mxu0 %v821_v3  ;;  %1303 = vmatpush.msra.mxu1 %v897_v20  ;;  %v877_v54 = vld [vmem:[#allocation8 + $0x330] sm:$0xff]  ;;  %v912_v3 = vld [vmem:[#allocation8 + $0x448] sm:$0xff] }
  0xf4   : > { %1060 = vmatmul.f32.gmra.mxu0 %v2511_v53  ;;  %1250 = vmatpush.msrb.mxu3 %v1004_v46  ;;  %v861_v20 = vld [vmem:[#allocation8 + $0x2b0] sm:$0xff]  ;;  %v972_v46 = vld [vmem:[#allocation8 + $0x628] sm:$0xff] }
  0xf5   : > { %v634_v0 = vpop.f32.mrf.mxu3  ;;  %1278 = vmatpush.msra.mxu0 %v817_v16  ;;  %1304 = vmatpush.msra.mxu1 %v893_v27  ;;  %v908_v16 = vld [vmem:[#allocation8 + $0x428] sm:$0xff]  ;;  %v965_v42 = vld [vmem:[#allocation8 + $0x5f0] sm:$0xff] }
  0xf6   : > { %v550_v4 = vpop.f32.mrf.mxu0  ;;  %v635_v5 = vadd.f32 %v634_v0, %v606_v58  ;;  %v924_v58 = vld [vmem:[#allocation8 + $0x4a8] sm:$0xff]  ;;  %1251 = vmatpush.msrb.mxu3 %v1000_v49  ;;  %v834_v49 = vld [vmem:[#allocation8 + $0x1d8] sm:$0xff] }
  0xf7   : > { %v551_v9 = vadd.f32 %v550_v4, %v2497_v6  ;;  %1279 = vmatpush.msra.mxu0 %v813_v30  ;;  %1305 = vmatpush.msra.mxu1 %v889_v32  ;;  %v920_v0 = vld [vmem:[#allocation8 + $0x488] sm:$0xff]  ;;  %v777_v30 = vld [vmem:[#allocation8 + $0x10] sm:$0xff] }
  0xf8   : > { %v2516_v12 = vmax.f32 %v635_v5, 0.0  ;;  %1252 = vmatpush.msrb.mxu3 %v996_v59  ;;  %v869_v5 = vld [vmem:[#allocation8 + $0x2f0] sm:$0xff] }
  0xf9   : > { %v579_v15 = vpop.f32.mrf.mxu1  ;;  %1280 = vmatpush.msra.mxu0 %v809_v37  ;;  %1306 = vmatpush.msra.mxu1 %v885_v41 }
  0xfa   : > { %v580_v19 = vadd.f32 %v579_v15, %v551_v9  ;;  %1089 = vmatmul.f32.gmra.mxu1 %v2516_v12  ;;  %1253 = vmatpush.msrb.mxu3 %v992_v1  ;;  %v2538_v15 = vperm.slane %v2494_v55, 3  ;;  %v781_v55 = vld [vmem:[#allocation8 + $0x30] sm:$0xff] }
  0xfb   : > { %1281 = vmatpush.msra.mxu0 %v805_v45  ;;  %1307 = vmatpush.msra.mxu1 %v881_v48 }
  0xfc   : > { %v2519_v23 = vmax.f32 %v580_v19, 0.0  ;;  %v608_v24 = vpop.f32.mrf.mxu2  ;;  %1254 = vmatpush.msrb.mxu3 %v988_v17  ;;  %v898_v17 = vld [vmem:[#allocation8 + $0x3d8] sm:$0xff] }
  0xfd   : > { %v609_v21 = vadd.f32 %v608_v24, %v2501_v18  ;;  %1282 = vmatpush.msra.mxu0 %v801_v52  ;;  %1308 = vmatpush.msra.mxu1 %v877_v54  ;;  %v984_v24 = vld [vmem:[#allocation8 + $0x688] sm:$0xff] }
  0xfe   : > { %1063 = vmatmul.f32.gmra.mxu0 %v2519_v23  ;;  %1255 = vmatpush.msrb.mxu3 %v984_v24  ;;  %v968_v54 = vld [vmem:[#allocation8 + $0x608] sm:$0xff] }
  0xff   : > { %v637_v31 = vpop.f32.mrf.mxu3  ;;  %1283 = vmatpush.msra.mxu0 %v797_v60  ;;  %1309 = vmatpush.msra.mxu1 %v873_v61  ;;  %v957_v60 = vld [vmem:[#allocation8 + $0x5b0] sm:$0xff] }
 0x100   : > { %v553_v34 = vpop.f32.mrf.mxu0  ;;  %v638_v35 = vadd.f32 %v637_v31, %v609_v21  ;;  %v857_v21 = vld [vmem:[#allocation8 + $0x290] sm:$0xff]  ;;  %1256 = vmatpush.msrb.mxu3 %v980_v29 }
 0x101   : > { %v554_v38 = vadd.f32 %v553_v34, %v2497_v6  ;;  %v928_v6 = vld [vmem:[#allocation8 + $0x4c8] sm:$0xff]  ;;  %1310 = vmatpush.msra.mxu1 %v869_v5  ;;  %v953_v5 = vld [vmem:[#allocation8 + $0x590] sm:$0xff] }
 0x102   : > { %v2524_v40 = vmax.f32 %v638_v35, 0.0  ;;  %1224 = vmatpush.msrb.mxu2 %v928_v6  ;;  %v853_v35 = vld [vmem:[#allocation8 + $0x270] sm:$0xff] }
 0x103   : > { %v582_v44 = vpop.f32.mrf.mxu1  ;;  %1311 = vmatpush.msra.mxu1 %v865_v13  ;;  %v961_v6 = vld [vmem:[#allocation8 + $0x5d0] sm:$0xff] }
 0x104   : > { %v583_v47 = vadd.f32 %v582_v44, %v554_v38  ;;  %1092 = vmatmul.f32.gmra.mxu1 %v2524_v40  ;;  %1225 = vmatpush.msrb.mxu2 %v924_v58  ;;  %v976_v38 = vld [vmem:[#allocation8 + $0x648] sm:$0xff]  ;;  %v838_v44 = vld [vmem:[#allocation8 + $0x1f8] sm:$0xff]  ;;  %v1017_v29 = vld [vmem:[#allocation8 + $0x790] sm:$0xff] }
 0x105   : > { %1312 = vmatpush.msra.mxu1 %v861_v20  ;;  %1257 = vmatpush.msrb.mxu3 %v976_v38  ;;  %v1021_v20 = vld [vmem:[#allocation8 + $0x7b0] sm:$0xff] }
 0x106   : > { %v2527_v50 = vmax.f32 %v583_v47, 0.0  ;;  %v611_v51 = vpop.f32.mrf.mxu2  ;;  %1226 = vmatpush.msrb.mxu2 %v920_v0  ;;  %v845_v47 = vld [vmem:[#allocation8 + $0x230] sm:$0xff] }
 0x107   : > { %v612_v56 = vadd.f32 %v611_v51, %v2501_v18  ;;  %v793_v18 = vld [vmem:[#allocation8 + $0x90] sm:$0xff]  ;;  %1313 = vmatpush.msra.mxu1 %v857_v21  ;;  %1258 = vmatpush.msrb.mxu3 %v972_v46  ;;  %v894_v21 = vld [vmem:[#allocation8 + $0x3b8] sm:$0xff] }
 0x108   : > { %1066 = vmatmul.f32.gmra.mxu0 %v2527_v50  ;;  %1227 = vmatpush.msrb.mxu2 %v916_v8  ;;  %v937_v38 = vld [vmem:[#allocation8 + $0x510] sm:$0xff] }
 0x109   : > { %v640_v63 = vpop.f32.mrf.mxu3  ;;  %1284 = vmatpush.msra.mxu0 %v793_v18  ;;  %1314 = vmatpush.msra.mxu1 %v853_v35  ;;  %v810_v35 = vld [vmem:[#allocation8 + $0x118] sm:$0xff] }
 0x10a   : > { %v641_v2 = vadd.f32 %v640_v63, %v612_v56  ;;  %v660_v4 = vpop.f32.mrf.mxu0  ;;  %1228 = vmatpush.msrb.mxu2 %v912_v3  ;;  %v841_v56 = vld [vmem:[#allocation8 + $0x210] sm:$0xff]  ;;  %v830_v63 = vld [vmem:[#allocation8 + $0x1b8] sm:$0xff]  ;;  %1259 = vmatpush.msrb.mxu3 %v968_v54 }
 0x10b   : > { %v661_v7 = vadd.f32 %v660_v4, %v2531_v57  ;;  %1285 = vmatpush.msra.mxu0 %v789_v11  ;;  %1315 = vmatpush.msra.mxu1 %v849_v39  ;;  %v826_v4 = vld [vmem:[#allocation8 + $0x198] sm:$0xff]  ;;  %v1001_v54 = vld [vmem:[#allocation8 + $0x710] sm:$0xff] }
 0x10c   : > { %v2535_v9 = vmax.f32 %v641_v2, 0.0  ;;  %v689_v10 = vpop.f32.mrf.mxu1  ;;  %1229 = vmatpush.msrb.mxu2 %v908_v16  ;;  %v1029_v2 = vld [vmem:[#allocation8 + $0x7f0] sm:$0xff]  ;;  %v822_v11 = vld [vmem:[#allocation8 + $0x178] sm:$0xff] }
 0x10d   : > { %v690_v14 = vadd.f32 %v689_v10, %v661_v7  ;;  %1286 = vmatpush.msra.mxu0 %v785_v62  ;;  %1316 = vmatpush.msra.mxu1 %v845_v47  ;;  %v902_v7 = vld [vmem:[#allocation8 + $0x3f8] sm:$0xff]  ;;  %v1025_v10 = vld [vmem:[#allocation8 + $0x7d0] sm:$0xff] }
 0x10e   : > { %1095 = vmatmul.f32.gmra.mxu1 %v2535_v9  ;;  %1230 = vmatpush.msrb.mxu2 %v904_v33  ;;  %v886_v39 = vld [vmem:[#allocation8 + $0x378] sm:$0xff]  ;;  %v933_v47 = vld [vmem:[#allocation8 + $0x4f0] sm:$0xff] }
 0x10f   : > { %v2541_v19 = vmax.f32 %v690_v14, 0.0  ;;  %1287 = vmatpush.msra.mxu0 %v781_v55  ;;  %1317 = vmatpush.msra.mxu1 %v841_v56  ;;  %v949_v14 = vld [vmem:[#allocation8 + $0x570] sm:$0xff]  ;;  %v798_v56 = vld [vmem:[#allocation8 + $0xb8] sm:$0xff] }
 0x110   : > { %v718_v22 = vpop.f32.mrf.mxu2  ;;  %1173 = vmatmul.f32.vlgmr.msrb.gmra.mxu0 %v2503_v26 }
 0x111   : > { %v719_v25 = vadd.f32 %v718_v22, %v2538_v15  ;;  %1115 = vmatmul.f32.vlgmr.msra.gmra.mxu2 %v2541_v19  ;;  %1288 = vmatpush.msra.mxu0 %v777_v30  ;;  %v818_v22 = vld [vmem:[#allocation8 + $0x158] sm:$0xff] }
 0x112   : > { %v663_v27 = vpop.f32.mrf.mxu0  ;;  %v747_v28 = vpop.f32.mrf.mxu3  ;;  %1331 = vmatpush.msra.mxu2 %v965_v42  ;;  %v814_v30 = vld [vmem:[#allocation8 + $0x138] sm:$0xff] }
 0x113   : > { %v664_v31 = vadd.f32 %v663_v27, %v2531_v57  ;;  %v748_v32 = vadd.f32 %v747_v28, %v719_v25  ;;  %1389 = vmatpush.msrb.mxu0 %v838_v44  ;;  %v945_v25 = vld [vmem:[#allocation8 + $0x550] sm:$0xff] }
 0x114   : > { %v692_v34 = vpop.f32.mrf.mxu1  ;;  %1332 = vmatpush.msra.mxu2 %v961_v6  ;;  %v1009_v44 = vld [vmem:[#allocation8 + $0x750] sm:$0xff] }
 0x115   : > { %v2547_v36 = vmax.f32 %v748_v32, 0.0  ;;  %v693_v37 = vadd.f32 %v692_v34, %v664_v31  ;;  %1390 = vmatpush.msrb.mxu0 %v834_v49  ;;  %v890_v32 = vld [vmem:[#allocation8 + $0x398] sm:$0xff]  ;;  %v1013_v34 = vld [vmem:[#allocation8 + $0x770] sm:$0xff] }
 0x116   : > { %1202 = vmatmul.f32.vlgmr.msrb.gmra.mxu1 %v2508_v43  ;;  %1333 = vmatpush.msra.mxu2 %v957_v60  ;;  %v802_v49 = vld [vmem:[#allocation8 + $0xd8] sm:$0xff]  ;;  %v997_v60 = vld [vmem:[#allocation8 + $0x6f0] sm:$0xff] }
 0x117   : > { %v2550_v41 = vmax.f32 %v693_v37, 0.0  ;;  %1144 = vmatmul.f32.vlgmr.msra.gmra.mxu3 %v2547_v36  ;;  %1391 = vmatpush.msrb.mxu0 %v830_v63  ;;  %v921_v63 = vld [vmem:[#allocation8 + $0x490] sm:$0xff] }
 0x118   : > { %v721_v45 = vpop.f32.mrf.mxu2  ;;  %1176 = vmatmul.f32.gmra.mxu0 %v2511_v53  ;;  %1360 = vmatpush.msra.mxu3 %v1029_v2  ;;  %v993_v2 = vld [vmem:[#allocation8 + $0x6d0] sm:$0xff] }
 0x119   : > { %v722_v48 = vadd.f32 %v721_v45, %v2538_v15  ;;  %1118 = vmatmul.f32.gmra.mxu2 %v2550_v41  ;;  %1392 = vmatpush.msrb.mxu0 %v826_v4  ;;  %v806_v45 = vld [vmem:[#allocation8 + $0xf8] sm:$0xff] }
 0x11a   : > { %v666_v51 = vpop.f32.mrf.mxu0  ;;  %v750_v52 = vpop.f32.mrf.mxu3  ;;  %1334 = vmatpush.msra.mxu2 %v953_v5  ;;  %1418 = vmatpush.msrb.mxu1 %v902_v7  ;;  %v790_v4 = vld [vmem:[#allocation8 + $0x78] sm:$0xff]  ;;  %v917_v5 = vld [vmem:[#allocation8 + $0x470] sm:$0xff] }
 0x11b   : > { %v667_v58 = vadd.f32 %v666_v51, %v2531_v57  ;;  %v751_v59 = vadd.f32 %v750_v52, %v722_v48  ;;  %1361 = vmatpush.msra.mxu3 %v1025_v10  ;;  %1393 = vmatpush.msrb.mxu0 %v822_v11  ;;  %v882_v48 = vld [vmem:[#allocation8 + $0x358] sm:$0xff]  ;;  %v929_v51 = vld [vmem:[#allocation8 + $0x4d0] sm:$0xff] }
 0x11c   : > { %v695_v61 = vpop.f32.mrf.mxu1  ;;  %1335 = vmatpush.msra.mxu2 %v949_v14  ;;  %1419 = vmatpush.msrb.mxu1 %v898_v17  ;;  %v878_v52 = vld [vmem:[#allocation8 + $0x338] sm:$0xff]  ;;  %v913_v11 = vld [vmem:[#allocation8 + $0x450] sm:$0xff] }
 0x11d   : > { %v2557_v0 = vmax.f32 %v751_v59, 0.0  ;;  %v696_v1 = vadd.f32 %v695_v61, %v667_v58  ;;  %1362 = vmatpush.msra.mxu3 %v1021_v20  ;;  %1394 = vmatpush.msrb.mxu0 %v818_v22  ;;  %v925_v58 = vld [vmem:[#allocation8 + $0x4b0] sm:$0xff]  ;;  %v874_v59 = vld [vmem:[#allocation8 + $0x318] sm:$0xff] }
 0x11e   : > { %1205 = vmatmul.f32.gmra.mxu1 %v2516_v12  ;;  %1336 = vmatpush.msra.mxu2 %v945_v25  ;;  %v794_v61 = vld [vmem:[#allocation8 + $0x98] sm:$0xff]  ;;  %v985_v14 = vld [vmem:[#allocation8 + $0x690] sm:$0xff] }
 0x11f   : > { %v2560_v18 = vmax.f32 %v696_v1, 0.0  ;;  %1147 = vmatmul.f32.gmra.mxu3 %v2557_v0  ;;  %1420 = vmatpush.msrb.mxu1 %v894_v21  ;;  %v870_v1 = vld [vmem:[#allocation8 + $0x2f8] sm:$0xff]  ;;  %v981_v20 = vld [vmem:[#allocation8 + $0x670] sm:$0xff] }
 0x120   : > { %v724_v8 = vpop.f32.mrf.mxu2  ;;  %1179 = vmatmul.f32.gmra.mxu0 %v2519_v23  ;;  %1363 = vmatpush.msra.mxu3 %v1017_v29  ;;  %v866_v7 = vld [vmem:[#allocation8 + $0x2d8] sm:$0xff]  ;;  %v977_v25 = vld [vmem:[#allocation8 + $0x650] sm:$0xff] }
 0x121   : > { %v725_v13 = vadd.f32 %v724_v8, %v2538_v15  ;;  %1121 = vmatmul.f32.gmra.mxu2 %v2560_v18  ;;  %1395 = vmatpush.msrb.mxu0 %v814_v30  ;;  %v989_v8 = vld [vmem:[#allocation8 + $0x6b0] sm:$0xff]  ;;  %v786_v10 = vld [vmem:[#allocation8 + $0x58] sm:$0xff] }
 0x122   : > { %v669_v62 = vpop.f32.mrf.mxu0  ;;  %v753_v3 = vpop.f32.mrf.mxu3  ;;  %1421 = vmatpush.msrb.mxu1 %v890_v32  ;;  %1364 = vmatpush.msra.mxu3 %v1013_v34  ;;  %v782_v17 = vld [vmem:[#allocation8 + $0x38] sm:$0xff] }
 0x123   : > { %v670_v24 = vadd.f32 %v669_v62, %v2531_v57  ;;  %v754_v55 = vadd.f32 %v753_v3, %v725_v13  ;;  %v941_v57 = vld [vmem:[#allocation8 + $0x530] sm:$0xff]  ;;  %1396 = vmatpush.msrb.mxu0 %v810_v35  ;;  %v862_v13 = vld [vmem:[#allocation8 + $0x2b8] sm:$0xff] }
 0x124   : > { %v698_v16 = vpop.f32.mrf.mxu1  ;;  %1337 = vmatpush.msra.mxu2 %v941_v57  ;;  %1422 = vmatpush.msrb.mxu1 %v886_v39  ;;  %v909_v62 = vld [vmem:[#allocation8 + $0x430] sm:$0xff]  ;;  %v858_v3 = vld [vmem:[#allocation8 + $0x298] sm:$0xff] }
 0x125   : > { %v2567_v27 = vmax.f32 %v754_v55, 0.0  ;;  %v699_v28 = vadd.f32 %v698_v16, %v670_v24  ;;  %1365 = vmatpush.msra.mxu3 %v1009_v44  ;;  %1397 = vmatpush.msrb.mxu0 %v806_v45  ;;  %v778_v22 = vld [vmem:[#allocation8 + $0x18] sm:$0xff]  ;;  %v905_v24 = vld [vmem:[#allocation8 + $0x410] sm:$0xff] }
 0x126   : > { %1208 = vmatmul.f32.gmra.mxu1 %v2524_v40  ;;  %1338 = vmatpush.msra.mxu2 %v937_v38  ;;  %v854_v55 = vld [vmem:[#allocation8 + $0x278] sm:$0xff]  ;;  %v969_v57 = vld [vmem:[#allocation8 + $0x610] sm:$0xff] }
 0x127   : > { %v2570_v31 = vmax.f32 %v699_v28, 0.0  ;;  %1150 = vmatmul.f32.gmra.mxu3 %v2567_v27  ;;  %1423 = vmatpush.msrb.mxu1 %v882_v48  ;;  %v966_v16 = vld [vmem:[#allocation8 + $0x5f8] sm:$0xff]  ;;  %v973_v28 = vld [vmem:[#allocation8 + $0x630] sm:$0xff] }
 0x128   : > { %v727_v33 = vpop.f32.mrf.mxu2  ;;  %1182 = vmatmul.f32.gmra.mxu0 %v2527_v50  ;;  %1339 = vmatpush.msra.mxu2 %v933_v47  ;;  %v850_v21 = vld [vmem:[#allocation8 + $0x258] sm:$0xff] }
 0x129   : > { %v728_v37 = vadd.f32 %v727_v33, %v2538_v15  ;;  %1124 = vmatmul.f32.gmra.mxu2 %v2570_v31  ;;  %v1005_v15 = vld [vmem:[#allocation8 + $0x730] sm:$0xff]  ;;  %1398 = vmatpush.msrb.mxu0 %v802_v49  ;;  %v962_v29 = vld [vmem:[#allocation8 + $0x5d8] sm:$0xff] }
 0x12a   : > { %v756_v42 = vpop.f32.mrf.mxu3  ;;  %1366 = vmatpush.msra.mxu3 %v1005_v15  ;;  %1340 = vmatpush.msra.mxu2 %v929_v51  ;;  %v846_v30 = vld [vmem:[#allocation8 + $0x238] sm:$0xff] }
 0x12b   : > { %v757_v46 = vadd.f32 %v756_v42, %v728_v37  ;;  %1424 = vmatpush.msrb.mxu1 %v878_v52  ;;  %1399 = vmatpush.msrb.mxu0 %v798_v56  ;;  %v842_v32 = vld [vmem:[#allocation8 + $0x218] sm:$0xff] }
 0x12c   : > { %1367 = vmatpush.msra.mxu3 %v1001_v54  ;;  %1341 = vmatpush.msra.mxu2 %v925_v58  ;;  %v958_v33 = vld [vmem:[#allocation8 + $0x5b8] sm:$0xff] }
 0x12d   : > { %v2576_v6 = vmax.f32 %v757_v46, 0.0  ;;  %1425 = vmatpush.msrb.mxu1 %v874_v59  ;;  %1400 = vmatpush.msrb.mxu0 %v794_v61  ;;  %v1030_v34 = vld [vmem:[#allocation8 + $0x7f8] sm:$0xff]  ;;  %v1534_v61 = vld [vmem:[#allocation11 + $0x68] sm:$0xff] }
 0x12e   : > { %1211 = vmatmul.f32.gmra.mxu1 %v2535_v9  ;;  %1368 = vmatpush.msra.mxu3 %v997_v60  ;;  %v954_v35 = vld [vmem:[#allocation8 + $0x598] sm:$0xff] }
 0x12f   : > { %1153 = vmatmul.f32.gmra.mxu3 %v2576_v6  ;;  %1342 = vmatpush.msra.mxu2 %v921_v63  ;;  %v1026_v37 = vld [vmem:[#allocation8 + $0x7d8] sm:$0xff] }
 0x130   : > { %1289 = vmatmul.f32.vlgmr.msra.gmra.mxu0 %v2503_v26  ;;  %1426 = vmatpush.msrb.mxu1 %v870_v1  ;;  %v950_v38 = vld [vmem:[#allocation8 + $0x578] sm:$0xff]  ;;  %v1533_v1 = vld [vmem:[#allocation11 + $0x60] sm:$0xff] }
 0x131   : > { %1231 = vmatmul.f32.vlgmr.msrb.gmra.mxu2 %v2541_v19  ;;  %1369 = vmatpush.msra.mxu3 %v993_v2  ;;  %v1022_v39 = vld [vmem:[#allocation8 + $0x7b8] sm:$0xff] }
 0x132   : > { %1401 = vmatpush.msrb.mxu0 %v790_v4  ;;  %1343 = vmatpush.msra.mxu2 %v917_v5  ;;  %v946_v42 = vld [vmem:[#allocation8 + $0x558] sm:$0xff] }
 0x133   : > { %1427 = vmatpush.msrb.mxu1 %v866_v7  ;;  %1370 = vmatpush.msra.mxu3 %v989_v8  ;;  %v1018_v44 = vld [vmem:[#allocation8 + $0x798] sm:$0xff] }
 0x134   : > { %1402 = vmatpush.msrb.mxu0 %v786_v10  ;;  %1344 = vmatpush.msra.mxu2 %v913_v11  ;;  %v942_v45 = vld [vmem:[#allocation8 + $0x538] sm:$0xff] }
 0x135   : > { %1428 = vmatpush.msrb.mxu1 %v862_v13  ;;  %1371 = vmatpush.msra.mxu3 %v985_v14  ;;  %v1014_v46 = vld [vmem:[#allocation8 + $0x778] sm:$0xff]  ;;  %v1529_v13 = vld [vmem:[#allocation11 + $0x40] sm:$0xff] }
 0x136   : > { %1318 = vmatmul.f32.vlgmr.msra.gmra.mxu1 %v2508_v43  ;;  %1403 = vmatpush.msrb.mxu0 %v782_v17  ;;  %v938_v47 = vld [vmem:[#allocation8 + $0x518] sm:$0xff]  ;;  %v1526_v17 = vld [vmem:[#allocation11 + $0x28] sm:$0xff] }
 0x137   : > { %1260 = vmatmul.f32.vlgmr.msrb.gmra.mxu3 %v2547_v36  ;;  %1345 = vmatpush.msra.mxu2 %v909_v62  ;;  %v1010_v48 = vld [vmem:[#allocation8 + $0x758] sm:$0xff] }
 0x138   : > { %1292 = vmatmul.f32.gmra.mxu0 %v2511_v53  ;;  %1429 = vmatpush.msrb.mxu1 %v858_v3  ;;  %v934_v15 = vld [vmem:[#allocation8 + $0x4f8] sm:$0xff]  ;;  %v1525_v3 = vld [vmem:[#allocation11 + $0x20] sm:$0xff] }
 0x139   : > { %1234 = vmatmul.f32.gmra.mxu2 %v2550_v41  ;;  %1372 = vmatpush.msra.mxu3 %v981_v20  ;;  %v1006_v49 = vld [vmem:[#allocation8 + $0x738] sm:$0xff] }
 0x13a   : > { %1404 = vmatpush.msrb.mxu0 %v778_v22  ;;  %1346 = vmatpush.msra.mxu2 %v905_v24  ;;  %v1002_v51 = vld [vmem:[#allocation8 + $0x718] sm:$0xff]  ;;  %v1522_v24 = vld [vmem:[#allocation11 + $0x8] sm:$0xff] }
 0x13b   : > { %1430 = vmatpush.msrb.mxu1 %v854_v55  ;;  %1373 = vmatpush.msra.mxu3 %v977_v25  ;;  %v926_v52 = vld [vmem:[#allocation8 + $0x4b8] sm:$0xff]  ;;  %v1521_v55 = vld [vmem:[#allocation11] sm:$0xff] }
 0x13c   : > { %1447 = vmatpush.msrb.mxu2 %v966_v16  ;;  %v998_v54 = vld [vmem:[#allocation8 + $0x6f8] sm:$0xff] }
 0x13d   : > { %1431 = vmatpush.msrb.mxu1 %v850_v21  ;;  %1374 = vmatpush.msra.mxu3 %v973_v28  ;;  %v994_v56 = vld [vmem:[#allocation8 + $0x6d8] sm:$0xff] }
 0x13e   : > { %1321 = vmatmul.f32.gmra.mxu1 %v2516_v12  ;;  %1448 = vmatpush.msrb.mxu2 %v962_v29  ;;  %v1536_v58 = vld [vmem:[#allocation11 + $0x78] sm:$0xff]  ;;  %v1535_v60 = vld [vmem:[#allocation11 + $0x70] sm:$0xff] }
 0x13f   : > { %1263 = vmatmul.f32.gmra.mxu3 %v2557_v0  ;;  %1432 = vmatpush.msrb.mxu1 %v846_v30  ;;  %v990_v59 = vld [vmem:[#allocation8 + $0x6b8] sm:$0xff] }
 0x140   : > { %1295 = vmatmul.f32.gmra.mxu0 %v2519_v23  ;;  %1375 = vmatpush.msra.mxu3 %v969_v57  ;;  %v914_v63 = vld [vmem:[#allocation8 + $0x458] sm:$0xff]  ;;  %v1546_v57 = vld [vmem:[#allocation11 + $0xc8] sm:$0xff] }
 0x141   : > { %1237 = vmatmul.f32.gmra.mxu2 %v2560_v18  ;;  %1433 = vmatpush.msrb.mxu1 %v842_v32  ;;  %v982_v2 = vld [vmem:[#allocation8 + $0x678] sm:$0xff]  ;;  %v2619_v32 = vld [vmem:[#allocation10] sm:$0xf] }
 0x142   : > { %1449 = vmatpush.msrb.mxu2 %v958_v33  ;;  %1476 = vmatpush.msrb.mxu3 %v1030_v34  ;;  %v1532_v4 = vld [vmem:[#allocation11 + $0x58] sm:$0xff]  ;;  %v1531_v8 = vld [vmem:[#allocation11 + $0x50] sm:$0xff]  ;;  %v1033_v33 = vperm.slane %v2619_v32, 0 }
 0x143   : > { %1589 = vmatpush.msra.mxu0 %v1536_v58  ;;  %v906_v5 = vld [vmem:[#allocation8 + $0x418] sm:$0xff] }
 0x144   : > { %1450 = vmatpush.msrb.mxu2 %v954_v35  ;;  %1477 = vmatpush.msrb.mxu3 %v1026_v37  ;;  %v978_v7 = vld [vmem:[#allocation8 + $0x658] sm:$0xff] }
 0x145   : > { %1590 = vmatpush.msra.mxu0 %v1535_v60  ;;  %v974_v10 = vld [vmem:[#allocation8 + $0x638] sm:$0xff] }
 0x146   : > { %1324 = vmatmul.f32.gmra.mxu1 %v2524_v40  ;;  %1451 = vmatpush.msrb.mxu2 %v950_v38  ;;  %v970_v11 = vld [vmem:[#allocation8 + $0x618] sm:$0xff] }
 0x147   : > { %1266 = vmatmul.f32.gmra.mxu3 %v2567_v27  ;;  %1591 = vmatpush.msra.mxu0 %v1534_v61  ;;  %v1527_v14 = vld [vmem:[#allocation11 + $0x30] sm:$0xff]  ;;  %v1524_v22 = vld [vmem:[#allocation11 + $0x18] sm:$0xff] }
 0x148   : > { %1298 = vmatmul.f32.gmra.mxu0 %v2527_v50  ;;  %1478 = vmatpush.msrb.mxu3 %v1022_v39  ;;  %v1552_v25 = vld [vmem:[#allocation11 + $0xf8] sm:$0xff]  ;;  %v1551_v21 = vld [vmem:[#allocation11 + $0xf0] sm:$0xff] }
 0x149   : > { %1240 = vmatmul.f32.gmra.mxu2 %v2570_v31  ;;  %1592 = vmatpush.msra.mxu0 %v1533_v1  ;;  %v1548_v28 = vld [vmem:[#allocation11 + $0xd8] sm:$0xff] }
 0x14a   : > { %1452 = vmatpush.msrb.mxu2 %v946_v42  ;;  %1479 = vmatpush.msrb.mxu3 %v1018_v44  ;;  %v1544_v34 = vld [vmem:[#allocation11 + $0xb8] sm:$0xff]  ;;  %v1541_v42 = vld [vmem:[#allocation11 + $0xa0] sm:$0xff] }
 0x14b   : > { %1593 = vmatpush.msra.mxu0 %v1532_v4  ;;  %1618 = vmatpush.msra.mxu1 %v1552_v25  ;;  %v1568_v58 = vld [vmem:[#allocation11 + $0x178] sm:$0xff] }
 0x14c   : > { %1453 = vmatpush.msrb.mxu2 %v942_v45  ;;  %1480 = vmatpush.msrb.mxu3 %v1014_v46  ;;  %v1540_v45 = vld [vmem:[#allocation11 + $0x98] sm:$0xff] }
 0x14d   : > { %1594 = vmatpush.msra.mxu0 %v1531_v8  ;;  %1619 = vmatpush.msra.mxu1 %v1551_v21 }
 0x14e   : > { %1327 = vmatmul.f32.gmra.mxu1 %v2535_v9  ;;  %1454 = vmatpush.msrb.mxu2 %v938_v47  ;;  %v1539_v47 = vld [vmem:[#allocation11 + $0x90] sm:$0xff] }
 0x14f   : > { %1269 = vmatmul.f32.gmra.mxu3 %v2576_v6 }
 0x150   : > { %1405 = vmatmul.f32.vlgmr.msrb.gmra.mxu0 %v2503_v26  ;;  %1481 = vmatpush.msrb.mxu3 %v1010_v48  ;;  %v930_v26 = vld [vmem:[#allocation8 + $0x4d8] sm:$0xff] }
 0x151   : > { %1347 = vmatmul.f32.vlgmr.msra.gmra.mxu2 %v2541_v19 }
 0x152   : > { %1455 = vmatpush.msrb.mxu2 %v934_v15  ;;  %1482 = vmatpush.msrb.mxu3 %v1006_v49  ;;  %v1538_v49 = vld [vmem:[#allocation11 + $0x88] sm:$0xff] }
 0x154   : > { %1456 = vmatpush.msrb.mxu2 %v930_v26  ;;  %1483 = vmatpush.msrb.mxu3 %v1002_v51 }
 0x156   : > { %1434 = vmatmul.f32.vlgmr.msrb.gmra.mxu1 %v2508_v43  ;;  %1457 = vmatpush.msrb.mxu2 %v926_v52  ;;  %v922_v43 = vld [vmem:[#allocation8 + $0x498] sm:$0xff] }
 0x157   : > { %1376 = vmatmul.f32.vlgmr.msra.gmra.mxu3 %v2547_v36 }
 0x158   : > { %1408 = vmatmul.f32.gmra.mxu0 %v2511_v53  ;;  %1484 = vmatpush.msrb.mxu3 %v998_v54  ;;  %v918_v53 = vld [vmem:[#allocation8 + $0x478] sm:$0xff]  ;;  %v1537_v54 = vld [vmem:[#allocation11 + $0x80] sm:$0xff] }
 0x159   : > { %1350 = vmatmul.f32.gmra.mxu2 %v2550_v41 }
 0x15a   : > { %1458 = vmatpush.msrb.mxu2 %v922_v43  ;;  %1485 = vmatpush.msrb.mxu3 %v994_v56 }
 0x15c   : > { %1459 = vmatpush.msrb.mxu2 %v918_v53  ;;  %1486 = vmatpush.msrb.mxu3 %v990_v59  ;;  %v1567_v59 = vld [vmem:[#allocation11 + $0x170] sm:$0xff] }
 0x15e   : > { %1437 = vmatmul.f32.gmra.mxu1 %v2516_v12  ;;  %v986_v12 = vld [vmem:[#allocation8 + $0x698] sm:$0xff]  ;;  %1460 = vmatpush.msrb.mxu2 %v914_v63 }
 0x15f   : > { %1379 = vmatmul.f32.gmra.mxu3 %v2557_v0 }
 0x160   : > { %1411 = vmatmul.f32.gmra.mxu0 %v2519_v23  ;;  %v910_v23 = vld [vmem:[#allocation8 + $0x438] sm:$0xff]  ;;  %1487 = vmatpush.msrb.mxu3 %v986_v12  ;;  %v1566_v12 = vld [vmem:[#allocation11 + $0x168] sm:$0xff] }
 0x161   : > { %1353 = vmatmul.f32.gmra.mxu2 %v2560_v18 }
 0x162   : > { %1461 = vmatpush.msrb.mxu2 %v910_v23  ;;  %1488 = vmatpush.msrb.mxu3 %v982_v2  ;;  %v1565_v2 = vld [vmem:[#allocation11 + $0x160] sm:$0xff] }
 0x164   : > { %1462 = vmatpush.msrb.mxu2 %v906_v5  ;;  %1489 = vmatpush.msrb.mxu3 %v978_v7  ;;  %v1564_v7 = vld [vmem:[#allocation11 + $0x158] sm:$0xff] }
 0x166   : > { %1440 = vmatmul.f32.gmra.mxu1 %v2524_v40  ;;  %v1530_v40 = vld [vmem:[#allocation11 + $0x48] sm:$0xff]  ;;  %1490 = vmatpush.msrb.mxu3 %v974_v10 }
 0x167   : > { %1382 = vmatmul.f32.gmra.mxu3 %v2567_v27  ;;  %1595 = vmatpush.msra.mxu0 %v1530_v40  ;;  %v1058_v62 = vpop.f32.mrf.mxu0  ;;  %v1563_v40 = vld [vmem:[#allocation11 + $0x150] sm:$0xff] }
 0x168   : > { %1414 = vmatmul.f32.gmra.mxu0 %v2527_v50  ;;  %v1528_v50 = vld [vmem:[#allocation11 + $0x38] sm:$0xff]  ;;  %1491 = vmatpush.msrb.mxu3 %v970_v11  ;;  %v1059_v37 = vadd.f32 %v1058_v62, %v1033_v33 }
 0x169   : > { %1356 = vmatmul.f32.gmra.mxu2 %v2570_v31  ;;  %1596 = vmatpush.msra.mxu0 %v1529_v13 }
 0x16a   : > { %1647 = vmatpush.msra.mxu2 %v1568_v58 }
 0x16b   : > { %1597 = vmatpush.msra.mxu0 %v1528_v50 }
 0x16c   : > { %1648 = vmatpush.msra.mxu2 %v1567_v59  ;;  %v1579_v59 = vld [vmem:[#allocation11 + $0x1d0] sm:$0xff] }
 0x16d   : > { %1598 = vmatpush.msra.mxu0 %v1527_v14  ;;  %v1087_v20 = vpop.f32.mrf.mxu1  ;;  %v1562_v14 = vld [vmem:[#allocation11 + $0x148] sm:$0xff] }
 0x16e   : > { %1443 = vmatmul.f32.gmra.mxu1 %v2535_v9  ;;  %v1523_v9 = vld [vmem:[#allocation11 + $0x10] sm:$0xff]  ;;  %v1088_v44 = vadd.f32 %v1087_v20, %v1059_v37  ;;  %1649 = vmatpush.msra.mxu2 %v1566_v12  ;;  %v1554_v37 = vld [vmem:[#allocation11 + $0x108] sm:$0xff] }
 0x16f   : > { %1385 = vmatmul.f32.gmra.mxu3 %v2576_v6  ;;  %1599 = vmatpush.msra.mxu0 %v1526_v17  ;;  %v1578_v12 = vld [vmem:[#allocation11 + $0x1c8] sm:$0xff] }
 0x170   : > { %1650 = vmatpush.msra.mxu2 %v1565_v2 }
 0x171   : > { %1463 = vmatmul.f32.vlgmr.msrb.gmra.mxu2 %v2541_v19  ;;  %1600 = vmatpush.msra.mxu0 %v1525_v3  ;;  %v1061_v19 = vpop.f32.mrf.mxu0  ;;  %v1561_v3 = vld [vmem:[#allocation11 + $0x140] sm:$0xff] }
 0x172   : > { %1651 = vmatpush.msra.mxu2 %v1564_v7 }
 0x173   : > { %1601 = vmatpush.msra.mxu0 %v1524_v22  ;;  %v1560_v22 = vld [vmem:[#allocation11 + $0x138] sm:$0xff] }
 0x174   : > { %1652 = vmatpush.msra.mxu2 %v1563_v40 }
 0x175   : > { %1602 = vmatpush.msra.mxu0 %v1523_v9 }
 0x176   : > { %1653 = vmatpush.msra.mxu2 %v1562_v14 }
 0x177   : > { %1492 = vmatmul.f32.vlgmr.msrb.gmra.mxu3 %v2547_v36  ;;  %1603 = vmatpush.msra.mxu0 %v1522_v24  ;;  %v1090_v16 = vpop.f32.mrf.mxu1  ;;  %v1550_v36 = vld [vmem:[#allocation11 + $0xe8] sm:$0xff]  ;;  %v1034_v24 = vperm.slane %v2619_v32, 1 }
 0x178   : > { %1620 = vmatpush.msra.mxu1 %v1550_v36  ;;  %1654 = vmatpush.msra.mxu2 %v1561_v3  ;;  %v1558_v36 = vld [vmem:[#allocation11 + $0x128] sm:$0xff] }
 0x179   : > { %1466 = vmatmul.f32.gmra.mxu2 %v2550_v41  ;;  %1604 = vmatpush.msra.mxu0 %v1521_v55  ;;  %v1549_v41 = vld [vmem:[#allocation11 + $0xe0] sm:$0xff] }
 0x17a   : > { %1621 = vmatpush.msra.mxu1 %v1549_v41  ;;  %1655 = vmatpush.msra.mxu2 %v1560_v22  ;;  %v1573_v22 = vld [vmem:[#allocation11 + $0x1a0] sm:$0xff] }
 0x17b   : > { %v1064_v29 = vpop.f32.mrf.mxu0 }
 0x17c   : > { %1622 = vmatpush.msra.mxu1 %v1548_v28  ;;  %v1065_v61 = vadd.f32 %v1064_v29, %v1033_v33 }
 0x17f   : > { %1495 = vmatmul.f32.gmra.mxu3 %v2557_v0  ;;  %v1547_v0 = vld [vmem:[#allocation11 + $0xd0] sm:$0xff] }
 0x180   : > { %1623 = vmatpush.msra.mxu1 %v1547_v0  ;;  %v1557_v0 = vld [vmem:[#allocation11 + $0x120] sm:$0xff] }
 0x181   : > { %1469 = vmatmul.f32.gmra.mxu2 %v2560_v18  ;;  %v1093_v30 = vpop.f32.mrf.mxu1  ;;  %v1545_v18 = vld [vmem:[#allocation11 + $0xc0] sm:$0xff] }
 0x182   : > { %1624 = vmatpush.msra.mxu1 %v1546_v57  ;;  %v1094_v5 = vadd.f32 %v1093_v30, %v1065_v61  ;;  %v1556_v57 = vld [vmem:[#allocation11 + $0x118] sm:$0xff] }
 0x184   : > { %1625 = vmatpush.msra.mxu1 %v1545_v18 }
 0x185   : > { %v1067_v35 = vpop.f32.mrf.mxu0 }
 0x186   : > { %1626 = vmatpush.msra.mxu1 %v1544_v34  ;;  %v1068_v13 = vadd.f32 %v1067_v35, %v1033_v33 }
 0x187   : > { %1498 = vmatmul.f32.gmra.mxu3 %v2567_v27  ;;  %v1543_v27 = vld [vmem:[#allocation11 + $0xb0] sm:$0xff] }
 0x188   : > { %1627 = vmatpush.msra.mxu1 %v1543_v27 }
 0x189   : > { %1472 = vmatmul.f32.gmra.mxu2 %v2570_v31  ;;  %v1542_v31 = vld [vmem:[#allocation11 + $0xa8] sm:$0xff] }
 0x18a   : > { %1628 = vmatpush.msra.mxu1 %v1542_v31 }
 0x18b   : > { %v1096_v38 = vpop.f32.mrf.mxu1 }
 0x18c   : > { %1629 = vmatpush.msra.mxu1 %v1541_v42  ;;  %v1097_v20 = vadd.f32 %v1096_v38, %v1068_v13 }
 0x18d   : > { %v1174_v26 = vpop.f32.mrf.mxu0 }
 0x18e   : > { %1630 = vmatpush.msra.mxu1 %v1540_v45  ;;  %v1175_v28 = vadd.f32 %v1174_v26, %v1034_v24 }
 0x18f   : > { %1501 = vmatmul.f32.gmra.mxu3 %v2576_v6  ;;  %v1062_v6 = vadd.f32 %v1061_v19, %v1033_v33  ;;  %v1559_v19 = vld [vmem:[#allocation11 + $0x130] sm:$0xff] }
 0x190   : > { %1631 = vmatpush.msra.mxu1 %v1539_v47  ;;  %1656 = vmatpush.msra.mxu2 %v1559_v19  ;;  %v1555_v33 = vld [vmem:[#allocation11 + $0x110] sm:$0xff] }
 0x191   : > { %v1091_v56 = vadd.f32 %v1090_v16, %v1062_v6  ;;  %v1583_v47 = vld [vmem:[#allocation11 + $0x1f0] sm:$0xff] }
 0x192   : > { %1632 = vmatpush.msra.mxu1 %v1538_v49  ;;  %1657 = vmatpush.msra.mxu2 %v1558_v36  ;;  %v1582_v49 = vld [vmem:[#allocation11 + $0x1e8] sm:$0xff] }
 0x193   : > { %v1203_v43 = vpop.f32.mrf.mxu1 }
 0x194   : > { %v1116_v39 = vpop.f32.mrf.mxu2  ;;  %1633 = vmatpush.msra.mxu1 %v1537_v54  ;;  %1658 = vmatpush.msra.mxu2 %v1557_v0  ;;  %v1204_v30 = vadd.f32 %v1203_v43, %v1175_v28  ;;  %v1581_v43 = vld [vmem:[#allocation11 + $0x1e0] sm:$0xff] }
 0x195   : > { %v1117_v46 = vadd.f32 %v1116_v39, %v1088_v44  ;;  %v1177_v4 = vpop.f32.mrf.mxu0  ;;  %v1553_v44 = vld [vmem:[#allocation11 + $0x100] sm:$0xff] }
 0x196   : > { %1659 = vmatpush.msra.mxu2 %v1556_v57  ;;  %v1178_v39 = vadd.f32 %v1177_v4, %v1034_v24  ;;  %v1577_v4 = vld [vmem:[#allocation11 + $0x1c0] sm:$0xff] }
 0x198   : > { %1660 = vmatpush.msra.mxu2 %v1555_v33 }
 0x19a   : > { %v1145_v48 = vpop.f32.mrf.mxu3  ;;  %1661 = vmatpush.msra.mxu2 %v1554_v37 }
 0x19b   : > { %v1146_v15 = vadd.f32 %v1145_v48, %v1117_v46  ;;  %v1206_v8 = vpop.f32.mrf.mxu1  ;;  %v1584_v46 = vld [vmem:[#allocation11 + $0x1f8] sm:$0xff] }
 0x19c   : > { %v1119_v51 = vpop.f32.mrf.mxu2  ;;  %1662 = vmatpush.msra.mxu2 %v1553_v44  ;;  %v1207_v45 = vadd.f32 %v1206_v8, %v1178_v39  ;;  %1676 = vmatpush.msra.mxu3 %v1584_v46  ;;  %v1576_v8 = vld [vmem:[#allocation11 + $0x1b8] sm:$0xff] }
 0x19d   : > { %v1505_v52 = vmax.f32 %v1146_v15, 0.0  ;;  %v1120_v53 = vadd.f32 %v1119_v51, %v1091_v56  ;;  %v1180_v9 = vpop.f32.mrf.mxu0 }
 0x19e   : > { %1677 = vmatpush.msra.mxu3 %v1583_v47 }
 0x19f   : > { %1605 = vmatmul.f32.vlgmr.msra.gmra.mxu0 %v1505_v52  ;;  %v1181_v52 = vadd.f32 %v1180_v9, %v1034_v24 }
 0x1a0   : > { %1678 = vmatpush.msra.mxu3 %v1582_v49 }
 0x1a2   : > { %v1148_v60 = vpop.f32.mrf.mxu3  ;;  %1679 = vmatpush.msra.mxu3 %v1581_v43 }
 0x1a3   : > { %v1149_v63 = vadd.f32 %v1148_v60, %v1120_v53  ;;  %v1209_v25 = vpop.f32.mrf.mxu1  ;;  %v1580_v53 = vld [vmem:[#allocation11 + $0x1d8] sm:$0xff] }
 0x1a4   : > { %v1122_v1 = vpop.f32.mrf.mxu2  ;;  %v1210_v58 = vadd.f32 %v1209_v25, %v1181_v52  ;;  %1680 = vmatpush.msra.mxu3 %v1580_v53 }
 0x1a5   : > { %v1509_v23 = vmax.f32 %v1149_v63, 0.0  ;;  %v1123_v10 = vadd.f32 %v1122_v1, %v1094_v5  ;;  %v1183_v34 = vpop.f32.mrf.mxu0 }
 0x1a6   : > { %1681 = vmatpush.msra.mxu3 %v1579_v59 }
 0x1a7   : > { %1608 = vmatmul.f32.gmra.mxu0 %v1509_v23  ;;  %v1184_v23 = vadd.f32 %v1183_v34, %v1034_v24  ;;  %v1572_v24 = vld [vmem:[#allocation11 + $0x198] sm:$0xff] }
 0x1a8   : > { %1682 = vmatpush.msra.mxu3 %v1578_v12 }
 0x1aa   : > { %v1151_v11 = vpop.f32.mrf.mxu3  ;;  %1683 = vmatpush.msra.mxu3 %v1577_v4 }
 0x1ab   : > { %v1152_v50 = vadd.f32 %v1151_v11, %v1123_v10  ;;  %v1212_v31 = vpop.f32.mrf.mxu1  ;;  %v1575_v10 = vld [vmem:[#allocation11 + $0x1b0] sm:$0xff]  ;;  %v1035_v11 = vperm.slane %v2619_v32, 2 }
 0x1ac   : > { %v1125_v17 = vpop.f32.mrf.mxu2  ;;  %v1213_v7 = vadd.f32 %v1212_v31, %v1184_v23  ;;  %1684 = vmatpush.msra.mxu3 %v1576_v8 }
 0x1ad   : > { %v1513_v62 = vmax.f32 %v1152_v50, 0.0  ;;  %v1126_v55 = vadd.f32 %v1125_v17, %v1097_v20  ;;  %v1290_v26 = vpop.f32.mrf.mxu0  ;;  %v1574_v17 = vld [vmem:[#allocation11 + $0x1a8] sm:$0xff] }
 0x1ae   : > { %1685 = vmatpush.msra.mxu3 %v1575_v10  ;;  %v1291_v3 = vadd.f32 %v1290_v26, %v1035_v11  ;;  %v1036_v26 = vperm.slane %v2619_v32, 3 }
 0x1af   : > { %1611 = vmatmul.f32.gmra.mxu0 %v1513_v62 }
 0x1b0   : > { %1686 = vmatpush.msra.mxu3 %v1574_v17 }
 0x1b2   : > { %v1154_v16 = vpop.f32.mrf.mxu3  ;;  %1687 = vmatpush.msra.mxu3 %v1573_v22 }
 0x1b3   : > { %v1155_v21 = vadd.f32 %v1154_v16, %v1126_v55  ;;  %v1319_v56 = vpop.f32.mrf.mxu1  ;;  %v1571_v55 = vld [vmem:[#allocation11 + $0x190] sm:$0xff] }
 0x1b4   : > { %v1232_v41 = vpop.f32.mrf.mxu2  ;;  %v1320_v9 = vadd.f32 %v1319_v56, %v1291_v3  ;;  %1688 = vmatpush.msra.mxu3 %v1572_v24 }
 0x1b5   : > { %v1517_v29 = vmax.f32 %v1155_v21, 0.0  ;;  %v1233_v18 = vadd.f32 %v1232_v41, %v1204_v30  ;;  %v1293_v5 = vpop.f32.mrf.mxu0  ;;  %v1570_v41 = vld [vmem:[#allocation11 + $0x188] sm:$0xff]  ;;  %v1569_v30 = vld [vmem:[#allocation11 + $0x180] sm:$0xff] }
 0x1b6   : > { %1689 = vmatpush.msra.mxu3 %v1571_v55 }
 0x1b7   : > { %1614 = vmatmul.f32.gmra.mxu0 %v1517_v29  ;;  %v1294_v29 = vadd.f32 %v1293_v5, %v1035_v11 }
 0x1b8   : > { %1690 = vmatpush.msra.mxu3 %v1570_v41 }
 0x1ba   : > { %v1261_v27 = vpop.f32.mrf.mxu3  ;;  %1691 = vmatpush.msra.mxu3 %v1569_v30 }
 0x1bb   : > { %v1262_v35 = vadd.f32 %v1261_v27, %v1233_v18  ;;  %v1322_v40 = vpop.f32.mrf.mxu1 }
 0x1bc   : > { %v1235_v38 = vpop.f32.mrf.mxu2  ;;  %v1323_v57 = vadd.f32 %v1322_v40, %v1294_v29  ;;  %v1979_v29 = vld [vmem:[%s2669_s6] ss:$0 sm:$0xff] }
 0x1bd   : > { %v1506_v42 = vmax.f32 %v1262_v35, 0.0  ;;  %v1236_v48 = vadd.f32 %v1235_v38, %v1207_v45  ;;  %v1296_v19 = vpop.f32.mrf.mxu0 }
 0x1be   : > { %v1297_v31 = vadd.f32 %v1296_v19, %v1035_v11 }
 0x1bf   : > { %1634 = vmatmul.f32.vlgmr.msra.gmra.mxu1 %v1506_v42 }
 0x1c2   : > { %v1264_v6 = vpop.f32.mrf.mxu3 }
 0x1c3   : > { %v1265_v15 = vadd.f32 %v1264_v6, %v1236_v48  ;;  %v1325_v16 = vpop.f32.mrf.mxu1 }
 0x1c4   : > { %v1238_v51 = vpop.f32.mrf.mxu2  ;;  %v1326_v39 = vadd.f32 %v1325_v16, %v1297_v31 }
 0x1c5   : > { %v1510_v54 = vmax.f32 %v1265_v15, 0.0  ;;  %v1239_v60 = vadd.f32 %v1238_v51, %v1210_v58  ;;  %v1299_v33 = vpop.f32.mrf.mxu0 }
 0x1c6   : > { %v1300_v48 = vadd.f32 %v1299_v33, %v1035_v11 }
 0x1c7   : > { %1637 = vmatmul.f32.gmra.mxu1 %v1510_v54 }
 0x1ca   : > { %v1267_v61 = vpop.f32.mrf.mxu3 }
 0x1cb   : > { %v1268_v63 = vadd.f32 %v1267_v61, %v1239_v60  ;;  %v1328_v35 = vpop.f32.mrf.mxu1 }
 0x1cc   : > { %v1241_v1 = vpop.f32.mrf.mxu2  ;;  %v1329_v49 = vadd.f32 %v1328_v35, %v1300_v48 }
 0x1cd   : > { %v1514_v2 = vmax.f32 %v1268_v63, 0.0  ;;  %v1242_v13 = vadd.f32 %v1241_v1, %v1213_v7  ;;  %v1406_v46 = vpop.f32.mrf.mxu0 }
 0x1ce   : > { %v1407_v56 = vadd.f32 %v1406_v46, %v1036_v26 }
 0x1cf   : > { %1640 = vmatmul.f32.gmra.mxu1 %v1514_v2 }
 0x1d2   : > { %v1270_v50 = vpop.f32.mrf.mxu3 }
 0x1d3   : > { %v1271_v14 = vadd.f32 %v1270_v50, %v1242_v13  ;;  %v1435_v15 = vpop.f32.mrf.mxu1 }
 0x1d4   : > { %v1348_v62 = vpop.f32.mrf.mxu2  ;;  %v1436_v59 = vadd.f32 %v1435_v15, %v1407_v56 }
 0x1d5   : > { %v1518_v20 = vmax.f32 %v1271_v14, 0.0  ;;  %v1349_v25 = vadd.f32 %v1348_v62, %v1320_v9  ;;  %v1409_v53 = vpop.f32.mrf.mxu0 }
 0x1d6   : > { %v1410_v23 = vadd.f32 %v1409_v53, %v1036_v26 }
 0x1d7   : > { %1643 = vmatmul.f32.gmra.mxu1 %v1518_v20 }
 0x1da   : > { %v1377_v21 = vpop.f32.mrf.mxu3 }
 0x1db   : > { %v1378_v36 = vadd.f32 %v1377_v21, %v1349_v25  ;;  %v1438_v60 = vpop.f32.mrf.mxu1 }
 0x1dc   : > { %v1351_v28 = vpop.f32.mrf.mxu2  ;;  %v1439_v4 = vadd.f32 %v1438_v60, %v1410_v23 }
 0x1dd   : > { %v1507_v0 = vmax.f32 %v1378_v36, 0.0  ;;  %v1352_v18 = vadd.f32 %v1351_v28, %v1323_v57  ;;  %v1412_v5 = vpop.f32.mrf.mxu0 }
 0x1de   : > { %v1413_v11 = vadd.f32 %v1412_v5, %v1036_v26 }
 0x1df   : > { %1663 = vmatmul.f32.vlgmr.msra.gmra.mxu2 %v1507_v0 }
 0x1e2   : > { %v1380_v34 = vpop.f32.mrf.mxu3 }
 0x1e3   : > { %v1381_v27 = vadd.f32 %v1380_v34, %v1352_v18  ;;  %v1441_v7 = vpop.f32.mrf.mxu1 }
 0x1e4   : > { %v1354_v37 = vpop.f32.mrf.mxu2  ;;  %v1442_v50 = vadd.f32 %v1441_v7, %v1413_v11 }
 0x1e5   : > { %v1511_v38 = vmax.f32 %v1381_v27, 0.0  ;;  %v1355_v42 = vadd.f32 %v1354_v37, %v1326_v39  ;;  %v1415_v17 = vpop.f32.mrf.mxu0 }
 0x1e6   : > { %v1416_v22 = vadd.f32 %v1415_v17, %v1036_v26 }
 0x1e7   : > { %1666 = vmatmul.f32.gmra.mxu2 %v1511_v38 }
 0x1ea   : > { %v1383_v44 = vpop.f32.mrf.mxu3 }
 0x1eb   : > { %v1384_v45 = vadd.f32 %v1383_v44, %v1355_v42  ;;  %v1444_v20 = vpop.f32.mrf.mxu1 }
 0x1ec   : > { %v1357_v47 = vpop.f32.mrf.mxu2  ;;  %v1445_v55 = vadd.f32 %v1444_v20, %v1416_v22 }
 0x1ed   : > { %v1515_v6 = vmax.f32 %v1384_v45, 0.0  ;;  %v1358_v51 = vadd.f32 %v1357_v47, %v1329_v49 }
 0x1ef   : > { %1669 = vmatmul.f32.gmra.mxu2 %v1515_v6 }
 0x1f2   : > { %v1386_v52 = vpop.f32.mrf.mxu3 }
 0x1f3   : > { %v1387_v54 = vadd.f32 %v1386_v52, %v1358_v51 }
 0x1f4   : > { %v1464_v43 = vpop.f32.mrf.mxu2 }
 0x1f5   : > { %v1519_v58 = vmax.f32 %v1387_v54, 0.0  ;;  %v1465_v61 = vadd.f32 %v1464_v43, %v1436_v59 }
 0x1f7   : > { %1672 = vmatmul.f32.gmra.mxu2 %v1519_v58 }
 0x1fa   : > { %v1493_v63 = vpop.f32.mrf.mxu3 }
 0x1fb   : > { %v1494_v12 = vadd.f32 %v1493_v63, %v1465_v61 }
 0x1fc   : > { %v1467_v1 = vpop.f32.mrf.mxu2 }
 0x1fd   : > { %v1508_v2 = vmax.f32 %v1494_v12, 0.0  ;;  %v1468_v32 = vadd.f32 %v1467_v1, %v1439_v4 }
 0x1ff   : > { %1692 = vmatmul.f32.vlgmr.msra.gmra.mxu3 %v1508_v2 }
 0x202   : > { %v1496_v8 = vpop.f32.mrf.mxu3 }
 0x203   : > { %v1497_v10 = vadd.f32 %v1496_v8, %v1468_v32 }
 0x204   : > { %v1470_v40 = vpop.f32.mrf.mxu2 }
 0x205   : > { %v1512_v13 = vmax.f32 %v1497_v10, 0.0  ;;  %v1471_v14 = vadd.f32 %v1470_v40, %v1442_v50 }
 0x207   : > { %1695 = vmatmul.f32.gmra.mxu3 %v1512_v13 }
 0x20a   : > { %v1499_v62 = vpop.f32.mrf.mxu3 }
 0x20b   : > { %v1500_v3 = vadd.f32 %v1499_v62, %v1471_v14 }
 0x20c   : > { %v1473_v24 = vpop.f32.mrf.mxu2 }
 0x20d   : > { %v1516_v9 = vmax.f32 %v1500_v3, 0.0  ;;  %v1474_v19 = vadd.f32 %v1473_v24, %v1445_v55 }
 0x20f   : > { %1698 = vmatmul.f32.gmra.mxu3 %v1516_v9 }
 0x212   : > { %v1502_v25 = vpop.f32.mrf.mxu3 }
 0x213   : > { %v1503_v16 = vadd.f32 %v1502_v25, %v1474_v19 }
 0x215   : > { %v1520_v21 = vmax.f32 %v1503_v16, 0.0 }
 0x217   : > { %1701 = vmatmul.f32.gmra.mxu3 %v1520_v21 }
 0x21c   : > { %v1606_v36 = vpop.f32.mrf.mxu0 }
 0x21d   : > { %v1607_v0 = vadd.f32 %v1979_v29, %v1606_v36 }
 0x224   : > { %v1609_v30 = vpop.f32.mrf.mxu0 }
 0x225   : > { %v1610_v37 = vadd.f32 %v1979_v29, %v1609_v30 }
 0x22c   : > { %v1612_v38 = vpop.f32.mrf.mxu0 }
 0x22d   : > { %v1613_v47 = vadd.f32 %v1979_v29, %v1612_v38 }
 0x234   : > { %v1615_v15 = vpop.f32.mrf.mxu0 }
 0x235   : > { %v1616_v52 = vadd.f32 %v1979_v29, %v1615_v15 }
 0x23c   : > { %v1635_v41 = vpop.f32.mrf.mxu1 }
 0x23d   : > { %v1636_v57 = vadd.f32 %v1635_v41, %v1607_v0 }
 0x244   : > { %v1638_v18 = vpop.f32.mrf.mxu1 }
 0x245   : > { %v1639_v31 = vadd.f32 %v1638_v18, %v1610_v37 }
 0x24c   : > { %v1641_v42 = vpop.f32.mrf.mxu1 }
 0x24d   : > { %v1642_v48 = vadd.f32 %v1641_v42, %v1613_v47 }
 0x254   : > { %v1644_v51 = vpop.f32.mrf.mxu1 }
 0x255   : > { %v1645_v43 = vadd.f32 %v1644_v51, %v1616_v52 }
 0x262   : > { %v1664_v28 = vpop.f32.mrf.mxu2 }
 0x263   : > { %v1665_v33 = vadd.f32 %v1664_v28, %v1636_v57 }
 0x26a   : > { %v1667_v34 = vpop.f32.mrf.mxu2 }
 0x26b   : > { %v1668_v39 = vadd.f32 %v1667_v34, %v1639_v31 }
 0x272   : > { %v1670_v46 = vpop.f32.mrf.mxu2 }
 0x273   : > { %v1671_v6 = vadd.f32 %v1670_v46, %v1642_v48 }
 0x27a   : > { %v1673_v54 = vpop.f32.mrf.mxu2 }
 0x27b   : > { %v1674_v56 = vadd.f32 %v1673_v54, %v1645_v43 }
 0x282   : > { %v1693_v27 = vpop.f32.mrf.mxu3 }
 0x283   : > { %v1694_v35 = vadd.f32 %v1693_v27, %v1665_v33 }
 0x285   : > { %1705 = vst [vmem:[%s378_s23] sm:$0xff] %v1694_v35 }
 0x28a   : > { %v1696_v44 = vpop.f32.mrf.mxu3 }
 0x28b   : > { %v1697_v45 = vadd.f32 %v1696_v44, %v1668_v39 }
 0x28d   : > { %1706 = vst [vmem:[%s378_s23 + $0x8] sm:$0xff] %v1697_v45 }
 0x292   : > { %v1699_v49 = vpop.f32.mrf.mxu3 }
 0x293   : > { %v1700_v26 = vadd.f32 %v1699_v49, %v1671_v6 }
 0x295   : > { %1707 = vst [vmem:[%s378_s23 + $0x10] sm:$0xff] %v1700_v26 }
 0x29a   : > { %v1702_v58 = vpop.f32.mrf.mxu3 }
 0x29b   : > { %v1703_v53 = vadd.f32 %v1702_v58, %v1674_v56 }
 0x29d   : > { %1708 = vst [vmem:[%s378_s23 + $0x18] sm:$0xff] %v1703_v53 }
 0x29e   : > { %2187 = shalt.err (!%p2184_p9)
}
 0x29f   : > { %s2251_s20 = smov 128   ;;  %s2252_s19 = smov 8  }
 0x2a0   : > { %1896 = dma.vmem_to_hbm [thread:$0]  (%p2383_p0), %s1723_s17, 512, %s1725_s10, %s1710_s8, %s2251_s20, %s2251_s20, %s2252_s19  }
 0x2a1 PF: > { %s1739_s23 = sand.u32 1, %s2226_s24   ;;  %p2682_p10 = scmp.ge.s32.totalorder %s2238_s27, 2 }
 0x2a2   : > { %s1740_s21 = scalar_lea.sflag [#allocation4], %s1739_s23 }
 0x2a3   : > { %p1919_p11 = pnand %p2682_p10, %p2389_p6 }
 0x2a5   : > { %p1920_p12 = pneg %p1919_p11 }
 0x2a7   : > { %2221 = dma.done.wait (%p1920_p12), %s1740_s21, 512  }
 0x2a8   : > { %2223 = vsyncadd (%p1920_p12), %s1740_s21, 4294966784  ;;  %p23_p2 = scmp.ge.s32.totalorder %s2359_s22, 4   ;;  %s2683_s24 = smov %s2230_s25 }
 0x2a9   : > { %s2684_s25 = smov %s2234_s26  ;;  %s2685_s26 = smov %s2371_s29 }
 0x2aa   : > { %s2686_s27 = smov %s2359_s22  ;;  %25 = sbr.rel (!%p23_p2) target bundleno = 11 (0xb), region = 113 }
 0x2af   :  { %1746 = vsyncpa [#allocation3], 1 }
 0x2b0   :  { %1748 = vsyncpa [#allocation3 + $0x1], 1 }
 0x2b1   :  { %1749 = vsyncpa [#allocation6], 1 }
 0x2b2   :  { %1750 = vsyncpa [#allocation9], 1 }
 0x2b3   :  { %1751 = vsyncpa [#allocation12], 1 }
 0x2b4   :  { %1752 = vsyncpa [#allocation4], 1 }
 0x2b5   :  { %1754 = vsyncpa [#allocation4 + $0x1], 1 }

</bundles_post_ra>
